<compile_context>
chip_gen: v6e
topology: v6e:2x2x1
jax: 0.10.0
libtpu: 0.0.40
codegen_flags: <defaults>
</compile_context>

<pallas_src>
import functools

import jax
import jax.numpy as jnp
from jax.experimental import pallas as pl
from jax.experimental.pallas import tpu as pltpu

INPUT_SIZE = 20
RNN_SIZE = 32          # small-shape stand-in for the original 200
NUM_LAYERS = 2
NUM_UNROLL = 5
BATCH = 4
BN_EPS = 1e-5


# ----------------------------------------------------------------------------
# Fused Pallas kernel: the whole unrolled GRU stack in one program.
# ----------------------------------------------------------------------------
def _gru_unroll_kernel(x_ref, s_ref, wx0_ref, wh0_ref, wdeep_ref, out_ref,
                       xh_ref, *, rnn_size, num_layers, num_unroll):
    R = rnn_size
    n = x_ref.shape[0]

    # ---- one-time setup (off the recurrent critical chain) ------------------
    # Layer-0 input is the same for every unroll step: compute ALL steps'
    # x-side gate pre-activations (+ the full layer-0 bias via the appended
    # constant-1 column) with a single wide MXU matmul.
    ones_col = jnp.ones((n, 1), jnp.float32)
    x_aug = jnp.concatenate([x_ref[...], ones_col], axis=1)        # (n, in+1)
    gx0_all = jnp.dot(x_aug, wx0_ref[...],
                      preferred_element_type=jnp.float32)           # (n, NU*4R)

    # Persistent [inp | h | 1] operand for the deep layers (bias is folded
    # into the weight's last row); the constant-1 lane is written once.
    xh_ref[:, 2 * R:2 * R + 1] = ones_col

    # Initial hidden states: h0[L] = init_states[:, 2L, :] of the (n, 2NL, R)
    # reshape == static lane slice of the flat init_states_input.
    hs = [s_ref[:, (2 * L) * R:(2 * L + 1) * R] for L in range(num_layers)]

    def gru_gates(g, h_prev):
        # g = [z_pre | r_pre | wx_n | uh_n], bias already included.
        # sigmoid(x) == 0.5*tanh(0.5*x)+0.5  (1 EUP op instead of exp+recip).
        zt = 0.5 * jnp.tanh(0.5 * g[:, 0:R]) + 0.5
        rt = 0.5 * jnp.tanh(0.5 * g[:, R:2 * R]) + 0.5
        h_cand = jnp.tanh(g[:, 2 * R:3 * R] + rt * g[:, 3 * R:4 * R])
        return (1.0 - zt) * h_prev + zt * h_cand

    # ---- unrolled recurrence -------------------------------------------------
    for i in range(num_unroll):
        # Layer 0: x-side (+bias) precomputed; only the h-side matmul remains
        # on the serial dependency chain.
        g0 = gx0_all[:, i * 4 * R:(i + 1) * 4 * R] + jnp.dot(
            hs[0], wh0_ref[i], preferred_element_type=jnp.float32)
        hs[0] = gru_gates(g0, hs[0])

        inp = hs[0]
        for L in range(1, num_layers):
            idx = i * (num_layers - 1) + (L - 1)
            # In-place update of the persistent [inp | h | 1] operand
            # (no per-cell concatenate).
            xh_ref[:, 0:R] = inp
            xh_ref[:, R:2 * R] = hs[L]
            g = jnp.dot(xh_ref[...], wdeep_ref[idx],
                        preferred_element_type=jnp.float32)         # (n, 4R)
            hs[L] = gru_gates(g, hs[L])
            inp = hs[L]

        # Store each step's last-layer hidden directly (no final concat).
        out_ref[:, i * R:(i + 1) * R] = hs[-1]


# ----------------------------------------------------------------------------
# Parameter init: per (unroll, layer) Linear + eval-mode BN folded & repacked.
# ----------------------------------------------------------------------------
def init_params(key):
    R = RNN_SIZE
    wx0_cols = []          # hoisted layer-0 x-side (+ bias row), per unroll step
    wh0_list = []          # layer-0 h-side, per unroll step
    wdeep_list = []        # layers >= 1: fused [x-side; h-side; bias]

    # Eval-mode BatchNorm1d with fresh running stats -> per-feature affine
    # (applied separately to the i2h and h2h paths, exactly as the reference).
    gamma = jnp.ones((3 * R,), jnp.float32)
    beta = jnp.zeros((3 * R,), jnp.float32)
    run_mean = jnp.zeros((3 * R,), jnp.float32)
    run_var = jnp.ones((3 * R,), jnp.float32)
    scale = gamma / jnp.sqrt(run_var + BN_EPS)
    shift = beta - run_mean * scale

    for i in range(NUM_UNROLL):
        for L in range(NUM_LAYERS):
            in_dim = INPUT_SIZE if L == 0 else R
            key, k1, k2, k3, k4 = jax.random.split(key, 5)
            bound_i = 1.0 / jnp.sqrt(in_dim)
            bound_h = 1.0 / jnp.sqrt(R)
            # stored as (in_features, out_features) == torch weight.T
            wi = jax.random.uniform(k1, (in_dim, 3 * R), jnp.float32,
                                    -bound_i, bound_i)
            bi = jax.random.uniform(k2, (3 * R,), jnp.float32,
                                    -bound_i, bound_i)
            wh = jax.random.uniform(k3, (R, 3 * R), jnp.float32,
                                    -bound_h, bound_h)
            bh = jax.random.uniform(k4, (3 * R,), jnp.float32,
                                    -bound_h, bound_h)

            # Exact eval-mode BN fold (BN applied to both paths separately).
            wi_f = wi * scale
            bi_f = bi * scale + shift
            wh_f = wh * scale
            bh_f = bh * scale + shift

            # Fused (in_dim, 4R) x-side: [Wi_z | Wi_r | Wi_n | 0]
            wx = jnp.concatenate(
                [wi_f, jnp.zeros((in_dim, R), jnp.float32)], axis=1)
            # Fused (R, 4R) h-side:      [Wh_z | Wh_r | 0 | Wh_n]
            whs = jnp.concatenate(
                [wh_f[:, 0:2 * R], jnp.zeros((R, R), jnp.float32),
                 wh_f[:, 2 * R:3 * R]], axis=1)
            # Fused (1, 4R) bias:        [bi_z+bh_z | bi_r+bh_r | bi_n | bh_n]
            bias = jnp.concatenate(
                [bi_f[0:2 * R] + bh_f[0:2 * R],
                 bi_f[2 * R:3 * R],
                 bh_f[2 * R:3 * R]])[None, :]

            if L == 0:
                # Hoisted layer-0 x-side with the full layer-0 bias as its
                # last row (matched by the constant-1 column appended to x).
                wx0_cols.append(jnp.concatenate([wx, bias], axis=0))   # (in+1,4R)
                wh0_list.append(whs)                                   # (R, 4R)
            else:
                wdeep_list.append(
                    jnp.concatenate([wx, whs, bias], axis=0))          # (2R+1,4R)

    w_x0 = jnp.concatenate(wx0_cols, axis=1)   # (INPUT_SIZE+1, NUM_UNROLL*4R)
    w_h0 = jnp.stack(wh0_list, axis=0)         # (NUM_UNROLL, R, 4R)
    w_deep = jnp.stack(wdeep_list, axis=0)     # (NU*(NL-1), 2R+1, 4R)
    return w_x0, w_h0, w_deep


# ----------------------------------------------------------------------------
# Wrapper: no padding / stacking ops — one grid-less pallas_call.
# ----------------------------------------------------------------------------
@jax.jit
def build_gru_unroll_net(x, init_states_input, w_x0, w_h0, w_deep):
    n = x.shape[0]
    R = RNN_SIZE
    vmem = pl.BlockSpec(memory_space=pltpu.MemorySpace.VMEM)
    kernel = functools.partial(
        _gru_unroll_kernel, rnn_size=R, num_layers=NUM_LAYERS,
        num_unroll=NUM_UNROLL)
    return pl.pallas_call(
        kernel,
        out_shape=jax.ShapeDtypeStruct((n, NUM_UNROLL * R), jnp.float32),
        in_specs=[vmem, vmem, vmem, vmem, vmem],
        out_specs=vmem,
        scratch_shapes=[pltpu.VMEM((n, 2 * R + 1), jnp.float32)],
    )(x, init_states_input, w_x0, w_h0, w_deep)


if __name__ == "__main__":
    key = jax.random.PRNGKey(0)
    key, kx, ks, kp = jax.random.split(key, 4)

    x = jax.random.uniform(kx, (BATCH, INPUT_SIZE), jnp.float32)
    init_states_input = jax.random.uniform(
        ks, (BATCH, NUM_LAYERS * 2 * RNN_SIZE), jnp.float32)
    w_x0, w_h0, w_deep = init_params(kp)

    out = build_gru_unroll_net(x, init_states_input, w_x0, w_h0, w_deep)
    out = jax.block_until_ready(out)

    assert out.shape == (BATCH, NUM_UNROLL * RNN_SIZE), out.shape
    assert out.dtype == jnp.float32
    assert bool(jnp.all(jnp.isfinite(out)))
    print("KERNEL_OK")
</pallas_src>

<mosaic_0001>
module attributes {stable_mosaic.version = 11 : i64} {
  func.func @_gru_unroll_kernel(%arg0: memref<4x20xf32, #tpu.memory_space<vmem>>, %arg1: memref<4x128xf32, #tpu.memory_space<vmem>>, %arg2: memref<21x640xf32, #tpu.memory_space<vmem>>, %arg3: memref<5x32x128xf32, #tpu.memory_space<vmem>>, %arg4: memref<5x65x128xf32, #tpu.memory_space<vmem>>, %arg5: memref<4x160xf32, #tpu.memory_space<vmem>>, %arg6: memref<4x65xf32, #tpu.memory_space<vmem>>) attributes {dimension_semantics = [], scalar_prefetch = 0 : i64, scratch_operands = 1 : i64, tpu.core_type = #tpu.core_type<tc>} {
    %cst = arith.constant 1.000000e+00 : f32
    %0 = vector.broadcast %cst : f32 to vector<4x1xf32>
    %c0 = arith.constant 0 : index
    %c0_0 = arith.constant 0 : index
    %1 = vector.load %arg0[%c0, %c0_0] : memref<4x20xf32, #tpu.memory_space<vmem>>, vector<4x20xf32>
    %2 = tpu.concatenate %1, %0 in 1 : vector<4x20xf32>, vector<4x1xf32> -> vector<4x21xf32>
    %c0_1 = arith.constant 0 : index
    %c0_2 = arith.constant 0 : index
    %3 = vector.load %arg2[%c0_1, %c0_2] : memref<21x640xf32, #tpu.memory_space<vmem>>, vector<21x640xf32>
    %cst_3 = arith.constant dense<0.000000e+00> : vector<4x640xf32>
    %4 = tpu.matmul %2, %3, %cst_3 {dimension_numbers = #tpu.dot_dimension_numbers<[1], [0], [0], [1], [0, 0, 1, 1], [], []>} : vector<4x21xf32>, vector<21x640xf32>, vector<4x640xf32> -> vector<4x640xf32>
    %c0_4 = arith.constant 0 : index
    %c64 = arith.constant 64 : index
    %5 = vector.load %arg6[%c0_4, %c64] : memref<4x65xf32, #tpu.memory_space<vmem>>, vector<4x1xf32>
    tpu.vector_store %arg6[%c0_4, %c64], %0 {strides = array<i32>} : memref<4x65xf32, #tpu.memory_space<vmem>>, vector<4x1xf32>,
    %c0_5 = arith.constant 0 : index
    %c0_6 = arith.constant 0 : index
    %6 = vector.load %arg1[%c0_5, %c0_6] : memref<4x128xf32, #tpu.memory_space<vmem>>, vector<4x32xf32>
    %c0_7 = arith.constant 0 : index
    %c64_8 = arith.constant 64 : index
    %7 = vector.load %arg1[%c0_7, %c64_8] : memref<4x128xf32, #tpu.memory_space<vmem>>, vector<4x32xf32>
    %8 = vector.extract_strided_slice %4 {offsets = [0, 0], sizes = [4, 128], strides = [1, 1]} : vector<4x640xf32> to vector<4x128xf32>
    %c0_9 = arith.constant 0 : index
    %c0_10 = arith.constant 0 : index
    %c0_11 = arith.constant 0 : index
    %9 = vector.load %arg3[%c0_9, %c0_10, %c0_11] : memref<5x32x128xf32, #tpu.memory_space<vmem>>, vector<1x32x128xf32>
    %10 = vector.shape_cast %9 : vector<1x32x128xf32> to vector<32x128xf32>
    %cst_12 = arith.constant dense<0.000000e+00> : vector<4x128xf32>
    %11 = tpu.matmul %6, %10, %cst_12 {dimension_numbers = #tpu.dot_dimension_numbers<[1], [0], [0], [1], [0, 0, 1, 1], [], []>} : vector<4x32xf32>, vector<32x128xf32>, vector<4x128xf32> -> vector<4x128xf32>
    %12 = arith.addf %8, %11 : vector<4x128xf32>
    %13 = vector.extract_strided_slice %12 {offsets = [0, 0], sizes = [4, 32], strides = [1, 1]} : vector<4x128xf32> to vector<4x32xf32>
    %cst_13 = arith.constant 5.000000e-01 : f32
    %14 = vector.broadcast %cst_13 : f32 to vector<4x32xf32>
    %15 = arith.mulf %14, %13 : vector<4x32xf32>
    %16 = math.tanh %15 : vector<4x32xf32>
    %cst_14 = arith.constant 5.000000e-01 : f32
    %17 = vector.broadcast %cst_14 : f32 to vector<4x32xf32>
    %18 = arith.mulf %17, %16 : vector<4x32xf32>
    %cst_15 = arith.constant 5.000000e-01 : f32
    %19 = vector.broadcast %cst_15 : f32 to vector<4x32xf32>
    %20 = arith.addf %18, %19 : vector<4x32xf32>
    %21 = vector.extract_strided_slice %12 {offsets = [0, 32], sizes = [4, 32], strides = [1, 1]} : vector<4x128xf32> to vector<4x32xf32>
    %cst_16 = arith.constant 5.000000e-01 : f32
    %22 = vector.broadcast %cst_16 : f32 to vector<4x32xf32>
    %23 = arith.mulf %22, %21 : vector<4x32xf32>
    %24 = math.tanh %23 : vector<4x32xf32>
    %cst_17 = arith.constant 5.000000e-01 : f32
    %25 = vector.broadcast %cst_17 : f32 to vector<4x32xf32>
    %26 = arith.mulf %25, %24 : vector<4x32xf32>
    %cst_18 = arith.constant 5.000000e-01 : f32
    %27 = vector.broadcast %cst_18 : f32 to vector<4x32xf32>
    %28 = arith.addf %26, %27 : vector<4x32xf32>
    %29 = vector.extract_strided_slice %12 {offsets = [0, 64], sizes = [4, 32], strides = [1, 1]} : vector<4x128xf32> to vector<4x32xf32>
    %30 = vector.extract_strided_slice %12 {offsets = [0, 96], sizes = [4, 32], strides = [1, 1]} : vector<4x128xf32> to vector<4x32xf32>
    %31 = arith.mulf %28, %30 : vector<4x32xf32>
    %32 = arith.addf %29, %31 : vector<4x32xf32>
    %33 = math.tanh %32 : vector<4x32xf32>
    %cst_19 = arith.constant 1.000000e+00 : f32
    %34 = vector.broadcast %cst_19 : f32 to vector<4x32xf32>
    %35 = arith.subf %34, %20 : vector<4x32xf32>
    %36 = arith.mulf %35, %6 : vector<4x32xf32>
    %37 = arith.mulf %20, %33 : vector<4x32xf32>
    %38 = arith.addf %36, %37 : vector<4x32xf32>
    %c0_20 = arith.constant 0 : index
    %c0_21 = arith.constant 0 : index
    %39 = vector.load %arg6[%c0_20, %c0_21] : memref<4x65xf32, #tpu.memory_space<vmem>>, vector<4x32xf32>
    tpu.vector_store %arg6[%c0_20, %c0_21], %38 {strides = array<i32>} : memref<4x65xf32, #tpu.memory_space<vmem>>, vector<4x32xf32>,
    %c0_22 = arith.constant 0 : index
    %c32 = arith.constant 32 : index
    %40 = vector.load %arg6[%c0_22, %c32] : memref<4x65xf32, #tpu.memory_space<vmem>>, vector<4x32xf32>
    tpu.vector_store %arg6[%c0_22, %c32], %7 {strides = array<i32>} : memref<4x65xf32, #tpu.memory_space<vmem>>, vector<4x32xf32>,
    %c0_23 = arith.constant 0 : index
    %c0_24 = arith.constant 0 : index
    %41 = vector.load %arg6[%c0_23, %c0_24] : memref<4x65xf32, #tpu.memory_space<vmem>>, vector<4x65xf32>
    %c0_25 = arith.constant 0 : index
    %c0_26 = arith.constant 0 : index
    %c0_27 = arith.constant 0 : index
    %42 = vector.load %arg4[%c0_25, %c0_26, %c0_27] : memref<5x65x128xf32, #tpu.memory_space<vmem>>, vector<1x65x128xf32>
    %43 = vector.shape_cast %42 : vector<1x65x128xf32> to vector<65x128xf32>
    %cst_28 = arith.constant dense<0.000000e+00> : vector<4x128xf32>
    %44 = tpu.matmul %41, %43, %cst_28 {dimension_numbers = #tpu.dot_dimension_numbers<[1], [0], [0], [1], [0, 0, 1, 1], [], []>} : vector<4x65xf32>, vector<65x128xf32>, vector<4x128xf32> -> vector<4x128xf32>
    %45 = vector.extract_strided_slice %44 {offsets = [0, 0], sizes = [4, 32], strides = [1, 1]} : vector<4x128xf32> to vector<4x32xf32>
    %cst_29 = arith.constant 5.000000e-01 : f32
    %46 = vector.broadcast %cst_29 : f32 to vector<4x32xf32>
    %47 = arith.mulf %46, %45 : vector<4x32xf32>
    %48 = math.tanh %47 : vector<4x32xf32>
    %cst_30 = arith.constant 5.000000e-01 : f32
    %49 = vector.broadcast %cst_30 : f32 to vector<4x32xf32>
    %50 = arith.mulf %49, %48 : vector<4x32xf32>
    %cst_31 = arith.constant 5.000000e-01 : f32
    %51 = vector.broadcast %cst_31 : f32 to vector<4x32xf32>
    %52 = arith.addf %50, %51 : vector<4x32xf32>
    %53 = vector.extract_strided_slice %44 {offsets = [0, 32], sizes = [4, 32], strides = [1, 1]} : vector<4x128xf32> to vector<4x32xf32>
    %cst_32 = arith.constant 5.000000e-01 : f32
    %54 = vector.broadcast %cst_32 : f32 to vector<4x32xf32>
    %55 = arith.mulf %54, %53 : vector<4x32xf32>
    %56 = math.tanh %55 : vector<4x32xf32>
    %cst_33 = arith.constant 5.000000e-01 : f32
    %57 = vector.broadcast %cst_33 : f32 to vector<4x32xf32>
    %58 = arith.mulf %57, %56 : vector<4x32xf32>
    %cst_34 = arith.constant 5.000000e-01 : f32
    %59 = vector.broadcast %cst_34 : f32 to vector<4x32xf32>
    %60 = arith.addf %58, %59 : vector<4x32xf32>
    %61 = vector.extract_strided_slice %44 {offsets = [0, 64], sizes = [4, 32], strides = [1, 1]} : vector<4x128xf32> to vector<4x32xf32>
    %62 = vector.extract_strided_slice %44 {offsets = [0, 96], sizes = [4, 32], strides = [1, 1]} : vector<4x128xf32> to vector<4x32xf32>
    %63 = arith.mulf %60, %62 : vector<4x32xf32>
    %64 = arith.addf %61, %63 : vector<4x32xf32>
    %65 = math.tanh %64 : vector<4x32xf32>
    %cst_35 = arith.constant 1.000000e+00 : f32
    %66 = vector.broadcast %cst_35 : f32 to vector<4x32xf32>
    %67 = arith.subf %66, %52 : vector<4x32xf32>
    %68 = arith.mulf %67, %7 : vector<4x32xf32>
    %69 = arith.mulf %52, %65 : vector<4x32xf32>
    %70 = arith.addf %68, %69 : vector<4x32xf32>
    %c0_36 = arith.constant 0 : index
    %c0_37 = arith.constant 0 : index
    %71 = vector.load %arg5[%c0_36, %c0_37] : memref<4x160xf32, #tpu.memory_space<vmem>>, vector<4x32xf32>
    tpu.vector_store %arg5[%c0_36, %c0_37], %70 {strides = array<i32>} : memref<4x160xf32, #tpu.memory_space<vmem>>, vector<4x32xf32>,
    %72 = vector.extract_strided_slice %4 {offsets = [0, 128], sizes = [4, 128], strides = [1, 1]} : vector<4x640xf32> to vector<4x128xf32>
    %c1 = arith.constant 1 : index
    %c0_38 = arith.constant 0 : index
    %c0_39 = arith.constant 0 : index
    %73 = vector.load %arg3[%c1, %c0_38, %c0_39] : memref<5x32x128xf32, #tpu.memory_space<vmem>>, vector<1x32x128xf32>
    %74 = vector.shape_cast %73 : vector<1x32x128xf32> to vector<32x128xf32>
    %cst_40 = arith.constant dense<0.000000e+00> : vector<4x128xf32>
    %75 = tpu.matmul %38, %74, %cst_40 {dimension_numbers = #tpu.dot_dimension_numbers<[1], [0], [0], [1], [0, 0, 1, 1], [], []>} : vector<4x32xf32>, vector<32x128xf32>, vector<4x128xf32> -> vector<4x128xf32>
    %76 = arith.addf %72, %75 : vector<4x128xf32>
    %77 = vector.extract_strided_slice %76 {offsets = [0, 0], sizes = [4, 32], strides = [1, 1]} : vector<4x128xf32> to vector<4x32xf32>
    %cst_41 = arith.constant 5.000000e-01 : f32
    %78 = vector.broadcast %cst_41 : f32 to vector<4x32xf32>
    %79 = arith.mulf %78, %77 : vector<4x32xf32>
    %80 = math.tanh %79 : vector<4x32xf32>
    %cst_42 = arith.constant 5.000000e-01 : f32
    %81 = vector.broadcast %cst_42 : f32 to vector<4x32xf32>
    %82 = arith.mulf %81, %80 : vector<4x32xf32>
    %cst_43 = arith.constant 5.000000e-01 : f32
    %83 = vector.broadcast %cst_43 : f32 to vector<4x32xf32>
    %84 = arith.addf %82, %83 : vector<4x32xf32>
    %85 = vector.extract_strided_slice %76 {offsets = [0, 32], sizes = [4, 32], strides = [1, 1]} : vector<4x128xf32> to vector<4x32xf32>
    %cst_44 = arith.constant 5.000000e-01 : f32
    %86 = vector.broadcast %cst_44 : f32 to vector<4x32xf32>
    %87 = arith.mulf %86, %85 : vector<4x32xf32>
    %88 = math.tanh %87 : vector<4x32xf32>
    %cst_45 = arith.constant 5.000000e-01 : f32
    %89 = vector.broadcast %cst_45 : f32 to vector<4x32xf32>
    %90 = arith.mulf %89, %88 : vector<4x32xf32>
    %cst_46 = arith.constant 5.000000e-01 : f32
    %91 = vector.broadcast %cst_46 : f32 to vector<4x32xf32>
    %92 = arith.addf %90, %91 : vector<4x32xf32>
    %93 = vector.extract_strided_slice %76 {offsets = [0, 64], sizes = [4, 32], strides = [1, 1]} : vector<4x128xf32> to vector<4x32xf32>
    %94 = vector.extract_strided_slice %76 {offsets = [0, 96], sizes = [4, 32], strides = [1, 1]} : vector<4x128xf32> to vector<4x32xf32>
    %95 = arith.mulf %92, %94 : vector<4x32xf32>
    %96 = arith.addf %93, %95 : vector<4x32xf32>
    %97 = math.tanh %96 : vector<4x32xf32>
    %cst_47 = arith.constant 1.000000e+00 : f32
    %98 = vector.broadcast %cst_47 : f32 to vector<4x32xf32>
    %99 = arith.subf %98, %84 : vector<4x32xf32>
    %100 = arith.mulf %99, %38 : vector<4x32xf32>
    %101 = arith.mulf %84, %97 : vector<4x32xf32>
    %102 = arith.addf %100, %101 : vector<4x32xf32>
    %c0_48 = arith.constant 0 : index
    %c0_49 = arith.constant 0 : index
    %103 = vector.load %arg6[%c0_48, %c0_49] : memref<4x65xf32, #tpu.memory_space<vmem>>, vector<4x32xf32>
    tpu.vector_store %arg6[%c0_48, %c0_49], %102 {strides = array<i32>} : memref<4x65xf32, #tpu.memory_space<vmem>>, vector<4x32xf32>,
    %c0_50 = arith.constant 0 : index
    %c32_51 = arith.constant 32 : index
    %104 = vector.load %arg6[%c0_50, %c32_51] : memref<4x65xf32, #tpu.memory_space<vmem>>, vector<4x32xf32>
    tpu.vector_store %arg6[%c0_50, %c32_51], %70 {strides = array<i32>} : memref<4x65xf32, #tpu.memory_space<vmem>>, vector<4x32xf32>,
    %c0_52 = arith.constant 0 : index
    %c0_53 = arith.constant 0 : index
    %105 = vector.load %arg6[%c0_52, %c0_53] : memref<4x65xf32, #tpu.memory_space<vmem>>, vector<4x65xf32>
    %c1_54 = arith.constant 1 : index
    %c0_55 = arith.constant 0 : index
    %c0_56 = arith.constant 0 : index
    %106 = vector.load %arg4[%c1_54, %c0_55, %c0_56] : memref<5x65x128xf32, #tpu.memory_space<vmem>>, vector<1x65x128xf32>
    %107 = vector.shape_cast %106 : vector<1x65x128xf32> to vector<65x128xf32>
    %cst_57 = arith.constant dense<0.000000e+00> : vector<4x128xf32>
    %108 = tpu.matmul %105, %107, %cst_57 {dimension_numbers = #tpu.dot_dimension_numbers<[1], [0], [0], [1], [0, 0, 1, 1], [], []>} : vector<4x65xf32>, vector<65x128xf32>, vector<4x128xf32> -> vector<4x128xf32>
    %109 = vector.extract_strided_slice %108 {offsets = [0, 0], sizes = [4, 32], strides = [1, 1]} : vector<4x128xf32> to vector<4x32xf32>
    %cst_58 = arith.constant 5.000000e-01 : f32
    %110 = vector.broadcast %cst_58 : f32 to vector<4x32xf32>
    %111 = arith.mulf %110, %109 : vector<4x32xf32>
    %112 = math.tanh %111 : vector<4x32xf32>
    %cst_59 = arith.constant 5.000000e-01 : f32
    %113 = vector.broadcast %cst_59 : f32 to vector<4x32xf32>
    %114 = arith.mulf %113, %112 : vector<4x32xf32>
    %cst_60 = arith.constant 5.000000e-01 : f32
    %115 = vector.broadcast %cst_60 : f32 to vector<4x32xf32>
    %116 = arith.addf %114, %115 : vector<4x32xf32>
    %117 = vector.extract_strided_slice %108 {offsets = [0, 32], sizes = [4, 32], strides = [1, 1]} : vector<4x128xf32> to vector<4x32xf32>
    %cst_61 = arith.constant 5.000000e-01 : f32
    %118 = vector.broadcast %cst_61 : f32 to vector<4x32xf32>
    %119 = arith.mulf %118, %117 : vector<4x32xf32>
    %120 = math.tanh %119 : vector<4x32xf32>
    %cst_62 = arith.constant 5.000000e-01 : f32
    %121 = vector.broadcast %cst_62 : f32 to vector<4x32xf32>
    %122 = arith.mulf %121, %120 : vector<4x32xf32>
    %cst_63 = arith.constant 5.000000e-01 : f32
    %123 = vector.broadcast %cst_63 : f32 to vector<4x32xf32>
    %124 = arith.addf %122, %123 : vector<4x32xf32>
    %125 = vector.extract_strided_slice %108 {offsets = [0, 64], sizes = [4, 32], strides = [1, 1]} : vector<4x128xf32> to vector<4x32xf32>
    %126 = vector.extract_strided_slice %108 {offsets = [0, 96], sizes = [4, 32], strides = [1, 1]} : vector<4x128xf32> to vector<4x32xf32>
    %127 = arith.mulf %124, %126 : vector<4x32xf32>
    %128 = arith.addf %125, %127 : vector<4x32xf32>
    %129 = math.tanh %128 : vector<4x32xf32>
    %cst_64 = arith.constant 1.000000e+00 : f32
    %130 = vector.broadcast %cst_64 : f32 to vector<4x32xf32>
    %131 = arith.subf %130, %116 : vector<4x32xf32>
    %132 = arith.mulf %131, %70 : vector<4x32xf32>
    %133 = arith.mulf %116, %129 : vector<4x32xf32>
    %134 = arith.addf %132, %133 : vector<4x32xf32>
    %c0_65 = arith.constant 0 : index
    %c32_66 = arith.constant 32 : index
    %135 = vector.load %arg5[%c0_65, %c32_66] : memref<4x160xf32, #tpu.memory_space<vmem>>, vector<4x32xf32>
    tpu.vector_store %arg5[%c0_65, %c32_66], %134 {strides = array<i32>} : memref<4x160xf32, #tpu.memory_space<vmem>>, vector<4x32xf32>,
    %136 = vector.extract_strided_slice %4 {offsets = [0, 256], sizes = [4, 128], strides = [1, 1]} : vector<4x640xf32> to vector<4x128xf32>
    %c2 = arith.constant 2 : index
    %c0_67 = arith.constant 0 : index
    %c0_68 = arith.constant 0 : index
    %137 = vector.load %arg3[%c2, %c0_67, %c0_68] : memref<5x32x128xf32, #tpu.memory_space<vmem>>, vector<1x32x128xf32>
    %138 = vector.shape_cast %137 : vector<1x32x128xf32> to vector<32x128xf32>
    %cst_69 = arith.constant dense<0.000000e+00> : vector<4x128xf32>
    %139 = tpu.matmul %102, %138, %cst_69 {dimension_numbers = #tpu.dot_dimension_numbers<[1], [0], [0], [1], [0, 0, 1, 1], [], []>} : vector<4x32xf32>, vector<32x128xf32>, vector<4x128xf32> -> vector<4x128xf32>
    %140 = arith.addf %136, %139 : vector<4x128xf32>
    %141 = vector.extract_strided_slice %140 {offsets = [0, 0], sizes = [4, 32], strides = [1, 1]} : vector<4x128xf32> to vector<4x32xf32>
    %cst_70 = arith.constant 5.000000e-01 : f32
    %142 = vector.broadcast %cst_70 : f32 to vector<4x32xf32>
    %143 = arith.mulf %142, %141 : vector<4x32xf32>
    %144 = math.tanh %143 : vector<4x32xf32>
    %cst_71 = arith.constant 5.000000e-01 : f32
    %145 = vector.broadcast %cst_71 : f32 to vector<4x32xf32>
    %146 = arith.mulf %145, %144 : vector<4x32xf32>
    %cst_72 = arith.constant 5.000000e-01 : f32
    %147 = vector.broadcast %cst_72 : f32 to vector<4x32xf32>
    %148 = arith.addf %146, %147 : vector<4x32xf32>
    %149 = vector.extract_strided_slice %140 {offsets = [0, 32], sizes = [4, 32], strides = [1, 1]} : vector<4x128xf32> to vector<4x32xf32>
    %cst_73 = arith.constant 5.000000e-01 : f32
    %150 = vector.broadcast %cst_73 : f32 to vector<4x32xf32>
    %151 = arith.mulf %150, %149 : vector<4x32xf32>
    %152 = math.tanh %151 : vector<4x32xf32>
    %cst_74 = arith.constant 5.000000e-01 : f32
    %153 = vector.broadcast %cst_74 : f32 to vector<4x32xf32>
    %154 = arith.mulf %153, %152 : vector<4x32xf32>
    %cst_75 = arith.constant 5.000000e-01 : f32
    %155 = vector.broadcast %cst_75 : f32 to vector<4x32xf32>
    %156 = arith.addf %154, %155 : vector<4x32xf32>
    %157 = vector.extract_strided_slice %140 {offsets = [0, 64], sizes = [4, 32], strides = [1, 1]} : vector<4x128xf32> to vector<4x32xf32>
    %158 = vector.extract_strided_slice %140 {offsets = [0, 96], sizes = [4, 32], strides = [1, 1]} : vector<4x128xf32> to vector<4x32xf32>
    %159 = arith.mulf %156, %158 : vector<4x32xf32>
    %160 = arith.addf %157, %159 : vector<4x32xf32>
    %161 = math.tanh %160 : vector<4x32xf32>
    %cst_76 = arith.constant 1.000000e+00 : f32
    %162 = vector.broadcast %cst_76 : f32 to vector<4x32xf32>
    %163 = arith.subf %162, %148 : vector<4x32xf32>
    %164 = arith.mulf %163, %102 : vector<4x32xf32>
    %165 = arith.mulf %148, %161 : vector<4x32xf32>
    %166 = arith.addf %164, %165 : vector<4x32xf32>
    %c0_77 = arith.constant 0 : index
    %c0_78 = arith.constant 0 : index
    %167 = vector.load %arg6[%c0_77, %c0_78] : memref<4x65xf32, #tpu.memory_space<vmem>>, vector<4x32xf32>
    tpu.vector_store %arg6[%c0_77, %c0_78], %166 {strides = array<i32>} : memref<4x65xf32, #tpu.memory_space<vmem>>, vector<4x32xf32>,
    %c0_79 = arith.constant 0 : index
    %c32_80 = arith.constant 32 : index
    %168 = vector.load %arg6[%c0_79, %c32_80] : memref<4x65xf32, #tpu.memory_space<vmem>>, vector<4x32xf32>
    tpu.vector_store %arg6[%c0_79, %c32_80], %134 {strides = array<i32>} : memref<4x65xf32, #tpu.memory_space<vmem>>, vector<4x32xf32>,
    %c0_81 = arith.constant 0 : index
    %c0_82 = arith.constant 0 : index
    %169 = vector.load %arg6[%c0_81, %c0_82] : memref<4x65xf32, #tpu.memory_space<vmem>>, vector<4x65xf32>
    %c2_83 = arith.constant 2 : index
    %c0_84 = arith.constant 0 : index
    %c0_85 = arith.constant 0 : index
    %170 = vector.load %arg4[%c2_83, %c0_84, %c0_85] : memref<5x65x128xf32, #tpu.memory_space<vmem>>, vector<1x65x128xf32>
    %171 = vector.shape_cast %170 : vector<1x65x128xf32> to vector<65x128xf32>
    %cst_86 = arith.constant dense<0.000000e+00> : vector<4x128xf32>
    %172 = tpu.matmul %169, %171, %cst_86 {dimension_numbers = #tpu.dot_dimension_numbers<[1], [0], [0], [1], [0, 0, 1, 1], [], []>} : vector<4x65xf32>, vector<65x128xf32>, vector<4x128xf32> -> vector<4x128xf32>
    %173 = vector.extract_strided_slice %172 {offsets = [0, 0], sizes = [4, 32], strides = [1, 1]} : vector<4x128xf32> to vector<4x32xf32>
    %cst_87 = arith.constant 5.000000e-01 : f32
    %174 = vector.broadcast %cst_87 : f32 to vector<4x32xf32>
    %175 = arith.mulf %174, %173 : vector<4x32xf32>
    %176 = math.tanh %175 : vector<4x32xf32>
    %cst_88 = arith.constant 5.000000e-01 : f32
    %177 = vector.broadcast %cst_88 : f32 to vector<4x32xf32>
    %178 = arith.mulf %177, %176 : vector<4x32xf32>
    %cst_89 = arith.constant 5.000000e-01 : f32
    %179 = vector.broadcast %cst_89 : f32 to vector<4x32xf32>
    %180 = arith.addf %178, %179 : vector<4x32xf32>
    %181 = vector.extract_strided_slice %172 {offsets = [0, 32], sizes = [4, 32], strides = [1, 1]} : vector<4x128xf32> to vector<4x32xf32>
    %cst_90 = arith.constant 5.000000e-01 : f32
    %182 = vector.broadcast %cst_90 : f32 to vector<4x32xf32>
    %183 = arith.mulf %182, %181 : vector<4x32xf32>
    %184 = math.tanh %183 : vector<4x32xf32>
    %cst_91 = arith.constant 5.000000e-01 : f32
    %185 = vector.broadcast %cst_91 : f32 to vector<4x32xf32>
    %186 = arith.mulf %185, %184 : vector<4x32xf32>
    %cst_92 = arith.constant 5.000000e-01 : f32
    %187 = vector.broadcast %cst_92 : f32 to vector<4x32xf32>
    %188 = arith.addf %186, %187 : vector<4x32xf32>
    %189 = vector.extract_strided_slice %172 {offsets = [0, 64], sizes = [4, 32], strides = [1, 1]} : vector<4x128xf32> to vector<4x32xf32>
    %190 = vector.extract_strided_slice %172 {offsets = [0, 96], sizes = [4, 32], strides = [1, 1]} : vector<4x128xf32> to vector<4x32xf32>
    %191 = arith.mulf %188, %190 : vector<4x32xf32>
    %192 = arith.addf %189, %191 : vector<4x32xf32>
    %193 = math.tanh %192 : vector<4x32xf32>
    %cst_93 = arith.constant 1.000000e+00 : f32
    %194 = vector.broadcast %cst_93 : f32 to vector<4x32xf32>
    %195 = arith.subf %194, %180 : vector<4x32xf32>
    %196 = arith.mulf %195, %134 : vector<4x32xf32>
    %197 = arith.mulf %180, %193 : vector<4x32xf32>
    %198 = arith.addf %196, %197 : vector<4x32xf32>
    %c0_94 = arith.constant 0 : index
    %c64_95 = arith.constant 64 : index
    %199 = vector.load %arg5[%c0_94, %c64_95] : memref<4x160xf32, #tpu.memory_space<vmem>>, vector<4x32xf32>
    tpu.vector_store %arg5[%c0_94, %c64_95], %198 {strides = array<i32>} : memref<4x160xf32, #tpu.memory_space<vmem>>, vector<4x32xf32>,
    %200 = vector.extract_strided_slice %4 {offsets = [0, 384], sizes = [4, 128], strides = [1, 1]} : vector<4x640xf32> to vector<4x128xf32>
    %c3 = arith.constant 3 : index
    %c0_96 = arith.constant 0 : index
    %c0_97 = arith.constant 0 : index
    %201 = vector.load %arg3[%c3, %c0_96, %c0_97] : memref<5x32x128xf32, #tpu.memory_space<vmem>>, vector<1x32x128xf32>
    %202 = vector.shape_cast %201 : vector<1x32x128xf32> to vector<32x128xf32>
    %cst_98 = arith.constant dense<0.000000e+00> : vector<4x128xf32>
    %203 = tpu.matmul %166, %202, %cst_98 {dimension_numbers = #tpu.dot_dimension_numbers<[1], [0], [0], [1], [0, 0, 1, 1], [], []>} : vector<4x32xf32>, vector<32x128xf32>, vector<4x128xf32> -> vector<4x128xf32>
    %204 = arith.addf %200, %203 : vector<4x128xf32>
    %205 = vector.extract_strided_slice %204 {offsets = [0, 0], sizes = [4, 32], strides = [1, 1]} : vector<4x128xf32> to vector<4x32xf32>
    %cst_99 = arith.constant 5.000000e-01 : f32
    %206 = vector.broadcast %cst_99 : f32 to vector<4x32xf32>
    %207 = arith.mulf %206, %205 : vector<4x32xf32>
    %208 = math.tanh %207 : vector<4x32xf32>
    %cst_100 = arith.constant 5.000000e-01 : f32
    %209 = vector.broadcast %cst_100 : f32 to vector<4x32xf32>
    %210 = arith.mulf %209, %208 : vector<4x32xf32>
    %cst_101 = arith.constant 5.000000e-01 : f32
    %211 = vector.broadcast %cst_101 : f32 to vector<4x32xf32>
    %212 = arith.addf %210, %211 : vector<4x32xf32>
    %213 = vector.extract_strided_slice %204 {offsets = [0, 32], sizes = [4, 32], strides = [1, 1]} : vector<4x128xf32> to vector<4x32xf32>
    %cst_102 = arith.constant 5.000000e-01 : f32
    %214 = vector.broadcast %cst_102 : f32 to vector<4x32xf32>
    %215 = arith.mulf %214, %213 : vector<4x32xf32>
    %216 = math.tanh %215 : vector<4x32xf32>
    %cst_103 = arith.constant 5.000000e-01 : f32
    %217 = vector.broadcast %cst_103 : f32 to vector<4x32xf32>
    %218 = arith.mulf %217, %216 : vector<4x32xf32>
    %cst_104 = arith.constant 5.000000e-01 : f32
    %219 = vector.broadcast %cst_104 : f32 to vector<4x32xf32>
    %220 = arith.addf %218, %219 : vector<4x32xf32>
    %221 = vector.extract_strided_slice %204 {offsets = [0, 64], sizes = [4, 32], strides = [1, 1]} : vector<4x128xf32> to vector<4x32xf32>
    %222 = vector.extract_strided_slice %204 {offsets = [0, 96], sizes = [4, 32], strides = [1, 1]} : vector<4x128xf32> to vector<4x32xf32>
    %223 = arith.mulf %220, %222 : vector<4x32xf32>
    %224 = arith.addf %221, %223 : vector<4x32xf32>
    %225 = math.tanh %224 : vector<4x32xf32>
    %cst_105 = arith.constant 1.000000e+00 : f32
    %226 = vector.broadcast %cst_105 : f32 to vector<4x32xf32>
    %227 = arith.subf %226, %212 : vector<4x32xf32>
    %228 = arith.mulf %227, %166 : vector<4x32xf32>
    %229 = arith.mulf %212, %225 : vector<4x32xf32>
    %230 = arith.addf %228, %229 : vector<4x32xf32>
    %c0_106 = arith.constant 0 : index
    %c0_107 = arith.constant 0 : index
    %231 = vector.load %arg6[%c0_106, %c0_107] : memref<4x65xf32, #tpu.memory_space<vmem>>, vector<4x32xf32>
    tpu.vector_store %arg6[%c0_106, %c0_107], %230 {strides = array<i32>} : memref<4x65xf32, #tpu.memory_space<vmem>>, vector<4x32xf32>,
    %c0_108 = arith.constant 0 : index
    %c32_109 = arith.constant 32 : index
    %232 = vector.load %arg6[%c0_108, %c32_109] : memref<4x65xf32, #tpu.memory_space<vmem>>, vector<4x32xf32>
    tpu.vector_store %arg6[%c0_108, %c32_109], %198 {strides = array<i32>} : memref<4x65xf32, #tpu.memory_space<vmem>>, vector<4x32xf32>,
    %c0_110 = arith.constant 0 : index
    %c0_111 = arith.constant 0 : index
    %233 = vector.load %arg6[%c0_110, %c0_111] : memref<4x65xf32, #tpu.memory_space<vmem>>, vector<4x65xf32>
    %c3_112 = arith.constant 3 : index
    %c0_113 = arith.constant 0 : index
    %c0_114 = arith.constant 0 : index
    %234 = vector.load %arg4[%c3_112, %c0_113, %c0_114] : memref<5x65x128xf32, #tpu.memory_space<vmem>>, vector<1x65x128xf32>
    %235 = vector.shape_cast %234 : vector<1x65x128xf32> to vector<65x128xf32>
    %cst_115 = arith.constant dense<0.000000e+00> : vector<4x128xf32>
    %236 = tpu.matmul %233, %235, %cst_115 {dimension_numbers = #tpu.dot_dimension_numbers<[1], [0], [0], [1], [0, 0, 1, 1], [], []>} : vector<4x65xf32>, vector<65x128xf32>, vector<4x128xf32> -> vector<4x128xf32>
    %237 = vector.extract_strided_slice %236 {offsets = [0, 0], sizes = [4, 32], strides = [1, 1]} : vector<4x128xf32> to vector<4x32xf32>
    %cst_116 = arith.constant 5.000000e-01 : f32
    %238 = vector.broadcast %cst_116 : f32 to vector<4x32xf32>
    %239 = arith.mulf %238, %237 : vector<4x32xf32>
    %240 = math.tanh %239 : vector<4x32xf32>
    %cst_117 = arith.constant 5.000000e-01 : f32
    %241 = vector.broadcast %cst_117 : f32 to vector<4x32xf32>
    %242 = arith.mulf %241, %240 : vector<4x32xf32>
    %cst_118 = arith.constant 5.000000e-01 : f32
    %243 = vector.broadcast %cst_118 : f32 to vector<4x32xf32>
    %244 = arith.addf %242, %243 : vector<4x32xf32>
    %245 = vector.extract_strided_slice %236 {offsets = [0, 32], sizes = [4, 32], strides = [1, 1]} : vector<4x128xf32> to vector<4x32xf32>
    %cst_119 = arith.constant 5.000000e-01 : f32
    %246 = vector.broadcast %cst_119 : f32 to vector<4x32xf32>
    %247 = arith.mulf %246, %245 : vector<4x32xf32>
    %248 = math.tanh %247 : vector<4x32xf32>
    %cst_120 = arith.constant 5.000000e-01 : f32
    %249 = vector.broadcast %cst_120 : f32 to vector<4x32xf32>
    %250 = arith.mulf %249, %248 : vector<4x32xf32>
    %cst_121 = arith.constant 5.000000e-01 : f32
    %251 = vector.broadcast %cst_121 : f32 to vector<4x32xf32>
    %252 = arith.addf %250, %251 : vector<4x32xf32>
    %253 = vector.extract_strided_slice %236 {offsets = [0, 64], sizes = [4, 32], strides = [1, 1]} : vector<4x128xf32> to vector<4x32xf32>
    %254 = vector.extract_strided_slice %236 {offsets = [0, 96], sizes = [4, 32], strides = [1, 1]} : vector<4x128xf32> to vector<4x32xf32>
    %255 = arith.mulf %252, %254 : vector<4x32xf32>
    %256 = arith.addf %253, %255 : vector<4x32xf32>
    %257 = math.tanh %256 : vector<4x32xf32>
    %cst_122 = arith.constant 1.000000e+00 : f32
    %258 = vector.broadcast %cst_122 : f32 to vector<4x32xf32>
    %259 = arith.subf %258, %244 : vector<4x32xf32>
    %260 = arith.mulf %259, %198 : vector<4x32xf32>
    %261 = arith.mulf %244, %257 : vector<4x32xf32>
    %262 = arith.addf %260, %261 : vector<4x32xf32>
    %c0_123 = arith.constant 0 : index
    %c96 = arith.constant 96 : index
    %263 = vector.load %arg5[%c0_123, %c96] : memref<4x160xf32, #tpu.memory_space<vmem>>, vector<4x32xf32>
    tpu.vector_store %arg5[%c0_123, %c96], %262 {strides = array<i32>} : memref<4x160xf32, #tpu.memory_space<vmem>>, vector<4x32xf32>,
    %264 = vector.extract_strided_slice %4 {offsets = [0, 512], sizes = [4, 128], strides = [1, 1]} : vector<4x640xf32> to vector<4x128xf32>
    %c4 = arith.constant 4 : index
    %c0_124 = arith.constant 0 : index
    %c0_125 = arith.constant 0 : index
    %265 = vector.load %arg3[%c4, %c0_124, %c0_125] : memref<5x32x128xf32, #tpu.memory_space<vmem>>, vector<1x32x128xf32>
    %266 = vector.shape_cast %265 : vector<1x32x128xf32> to vector<32x128xf32>
    %cst_126 = arith.constant dense<0.000000e+00> : vector<4x128xf32>
    %267 = tpu.matmul %230, %266, %cst_126 {dimension_numbers = #tpu.dot_dimension_numbers<[1], [0], [0], [1], [0, 0, 1, 1], [], []>} : vector<4x32xf32>, vector<32x128xf32>, vector<4x128xf32> -> vector<4x128xf32>
    %268 = arith.addf %264, %267 : vector<4x128xf32>
    %269 = vector.extract_strided_slice %268 {offsets = [0, 0], sizes = [4, 32], strides = [1, 1]} : vector<4x128xf32> to vector<4x32xf32>
    %cst_127 = arith.constant 5.000000e-01 : f32
    %270 = vector.broadcast %cst_127 : f32 to vector<4x32xf32>
    %271 = arith.mulf %270, %269 : vector<4x32xf32>
    %272 = math.tanh %271 : vector<4x32xf32>
    %cst_128 = arith.constant 5.000000e-01 : f32
    %273 = vector.broadcast %cst_128 : f32 to vector<4x32xf32>
    %274 = arith.mulf %273, %272 : vector<4x32xf32>
    %cst_129 = arith.constant 5.000000e-01 : f32
    %275 = vector.broadcast %cst_129 : f32 to vector<4x32xf32>
    %276 = arith.addf %274, %275 : vector<4x32xf32>
    %277 = vector.extract_strided_slice %268 {offsets = [0, 32], sizes = [4, 32], strides = [1, 1]} : vector<4x128xf32> to vector<4x32xf32>
    %cst_130 = arith.constant 5.000000e-01 : f32
    %278 = vector.broadcast %cst_130 : f32 to vector<4x32xf32>
    %279 = arith.mulf %278, %277 : vector<4x32xf32>
    %280 = math.tanh %279 : vector<4x32xf32>
    %cst_131 = arith.constant 5.000000e-01 : f32
    %281 = vector.broadcast %cst_131 : f32 to vector<4x32xf32>
    %282 = arith.mulf %281, %280 : vector<4x32xf32>
    %cst_132 = arith.constant 5.000000e-01 : f32
    %283 = vector.broadcast %cst_132 : f32 to vector<4x32xf32>
    %284 = arith.addf %282, %283 : vector<4x32xf32>
    %285 = vector.extract_strided_slice %268 {offsets = [0, 64], sizes = [4, 32], strides = [1, 1]} : vector<4x128xf32> to vector<4x32xf32>
    %286 = vector.extract_strided_slice %268 {offsets = [0, 96], sizes = [4, 32], strides = [1, 1]} : vector<4x128xf32> to vector<4x32xf32>
    %287 = arith.mulf %284, %286 : vector<4x32xf32>
    %288 = arith.addf %285, %287 : vector<4x32xf32>
    %289 = math.tanh %288 : vector<4x32xf32>
    %cst_133 = arith.constant 1.000000e+00 : f32
    %290 = vector.broadcast %cst_133 : f32 to vector<4x32xf32>
    %291 = arith.subf %290, %276 : vector<4x32xf32>
    %292 = arith.mulf %291, %230 : vector<4x32xf32>
    %293 = arith.mulf %276, %289 : vector<4x32xf32>
    %294 = arith.addf %292, %293 : vector<4x32xf32>
    %c0_134 = arith.constant 0 : index
    %c0_135 = arith.constant 0 : index
    %295 = vector.load %arg6[%c0_134, %c0_135] : memref<4x65xf32, #tpu.memory_space<vmem>>, vector<4x32xf32>
    tpu.vector_store %arg6[%c0_134, %c0_135], %294 {strides = array<i32>} : memref<4x65xf32, #tpu.memory_space<vmem>>, vector<4x32xf32>,
    %c0_136 = arith.constant 0 : index
    %c32_137 = arith.constant 32 : index
    %296 = vector.load %arg6[%c0_136, %c32_137] : memref<4x65xf32, #tpu.memory_space<vmem>>, vector<4x32xf32>
    tpu.vector_store %arg6[%c0_136, %c32_137], %262 {strides = array<i32>} : memref<4x65xf32, #tpu.memory_space<vmem>>, vector<4x32xf32>,
    %c0_138 = arith.constant 0 : index
    %c0_139 = arith.constant 0 : index
    %297 = vector.load %arg6[%c0_138, %c0_139] : memref<4x65xf32, #tpu.memory_space<vmem>>, vector<4x65xf32>
    %c4_140 = arith.constant 4 : index
    %c0_141 = arith.constant 0 : index
    %c0_142 = arith.constant 0 : index
    %298 = vector.load %arg4[%c4_140, %c0_141, %c0_142] : memref<5x65x128xf32, #tpu.memory_space<vmem>>, vector<1x65x128xf32>
    %299 = vector.shape_cast %298 : vector<1x65x128xf32> to vector<65x128xf32>
    %cst_143 = arith.constant dense<0.000000e+00> : vector<4x128xf32>
    %300 = tpu.matmul %297, %299, %cst_143 {dimension_numbers = #tpu.dot_dimension_numbers<[1], [0], [0], [1], [0, 0, 1, 1], [], []>} : vector<4x65xf32>, vector<65x128xf32>, vector<4x128xf32> -> vector<4x128xf32>
    %301 = vector.extract_strided_slice %300 {offsets = [0, 0], sizes = [4, 32], strides = [1, 1]} : vector<4x128xf32> to vector<4x32xf32>
    %cst_144 = arith.constant 5.000000e-01 : f32
    %302 = vector.broadcast %cst_144 : f32 to vector<4x32xf32>
    %303 = arith.mulf %302, %301 : vector<4x32xf32>
    %304 = math.tanh %303 : vector<4x32xf32>
    %cst_145 = arith.constant 5.000000e-01 : f32
    %305 = vector.broadcast %cst_145 : f32 to vector<4x32xf32>
    %306 = arith.mulf %305, %304 : vector<4x32xf32>
    %cst_146 = arith.constant 5.000000e-01 : f32
    %307 = vector.broadcast %cst_146 : f32 to vector<4x32xf32>
    %308 = arith.addf %306, %307 : vector<4x32xf32>
    %309 = vector.extract_strided_slice %300 {offsets = [0, 32], sizes = [4, 32], strides = [1, 1]} : vector<4x128xf32> to vector<4x32xf32>
    %cst_147 = arith.constant 5.000000e-01 : f32
    %310 = vector.broadcast %cst_147 : f32 to vector<4x32xf32>
    %311 = arith.mulf %310, %309 : vector<4x32xf32>
    %312 = math.tanh %311 : vector<4x32xf32>
    %cst_148 = arith.constant 5.000000e-01 : f32
    %313 = vector.broadcast %cst_148 : f32 to vector<4x32xf32>
    %314 = arith.mulf %313, %312 : vector<4x32xf32>
    %cst_149 = arith.constant 5.000000e-01 : f32
    %315 = vector.broadcast %cst_149 : f32 to vector<4x32xf32>
    %316 = arith.addf %314, %315 : vector<4x32xf32>
    %317 = vector.extract_strided_slice %300 {offsets = [0, 64], sizes = [4, 32], strides = [1, 1]} : vector<4x128xf32> to vector<4x32xf32>
    %318 = vector.extract_strided_slice %300 {offsets = [0, 96], sizes = [4, 32], strides = [1, 1]} : vector<4x128xf32> to vector<4x32xf32>
    %319 = arith.mulf %316, %318 : vector<4x32xf32>
    %320 = arith.addf %317, %319 : vector<4x32xf32>
    %321 = math.tanh %320 : vector<4x32xf32>
    %cst_150 = arith.constant 1.000000e+00 : f32
    %322 = vector.broadcast %cst_150 : f32 to vector<4x32xf32>
    %323 = arith.subf %322, %308 : vector<4x32xf32>
    %324 = arith.mulf %323, %262 : vector<4x32xf32>
    %325 = arith.mulf %308, %321 : vector<4x32xf32>
    %326 = arith.addf %324, %325 : vector<4x32xf32>
    %c0_151 = arith.constant 0 : index
    %c128 = arith.constant 128 : index
    %327 = vector.load %arg5[%c0_151, %c128] : memref<4x160xf32, #tpu.memory_space<vmem>>, vector<4x32xf32>
    tpu.vector_store %arg5[%c0_151, %c128], %326 {strides = array<i32>} : memref<4x160xf32, #tpu.memory_space<vmem>>, vector<4x32xf32>,
    return
  }
}

</mosaic_0001>

<bundles_post_ra>
// kernel: build_gru_unroll_net.1
= control target key start
LH: loop header
LB: loop body
LE: loop exit
PB: predicated region body
PF: predicated region fallthrough
CT: control target
= control target key end

     0   :  { %10 = vsyncpa [#allocation4], 0  ;;  %s2208_s0 = inlined_call_operand.hbm [shape: f32[4,20], index: 0, kind: input, shape index: {}]   ;;  %s2209_s1 = inlined_call_operand.hbm [shape: f32[4,128], index: 1, kind: input, shape index: {}]   ;;  %s2210_s2 = inlined_call_operand.hbm [shape: f32[21,640], index: 2, kind: input, shape index: {}]   ;;  %s2211_s3 = inlined_call_operand.hbm [shape: f32[5,32,128], index: 3, kind: input, shape index: {}]   ;;  %s2212_s4 = inlined_call_operand.hbm [shape: f32[5,65,128], index: 4, kind: input, shape index: {}]   ;;  %s2213_s5 = inlined_call_operand.hbm [shape: f32[4,160], index: 5, kind: output, shape index: {}]  }
   0x1   :  { %11 = vsyncpa [#allocation7], 0 }
   0x2   :  { %12 = vsyncpa [#allocation10], 0 }
   0x3   :  { %13 = vsyncpa [#allocation5], 0  ;;  %s1918_s18 = smov [#allocation6]   ;;  %s1919_s20 = smov [#allocation9]  }
   0x4   :  { %s30_s19 = sshll.u32 %s1918_s18, 4  ;;  %s51_s21 = sshll.u32 %s1919_s20, 4  ;;  %s31_s19 = int_to_ptr.vmem [resolvable:$true] %s30_s19  ;;  %s52_s21 = int_to_ptr.vmem [resolvable:$true] %s51_s21 }
   0x5   :  { %s1798_s22 = scalar_lea.vmem %s31_s19, 64  ;;  %p1803_p1 = scmp.lt.s32.totalorder %s31_s19, %s31_s19 }
   0x6   :  { %p1799_p0 = scmp.ne.s32.totalorder %s31_s19, %s1798_s22  ;;  %p1804_p2 = scmp.lt.s32.totalorder %s1798_s22, %s1798_s22 }
   0x8   :  { %p1805_p3 = por %p1804_p2, %p1803_p1 }
   0xa   :  { %p1806_p4 = pnand %p1805_p3, %p1799_p0 }
   0xc   :  { %1809 = shalt.err (!%p1806_p4)
}
   0xd   :  { %33 = dma.hbm_to_vmem [thread:$0]  %s2209_s1, 64, %s31_s19, [#allocation7]  }
   0xe   :  { %s1818_s25 = scalar_lea.vmem %s52_s21, 2560  ;;  %p1823_p6 = scmp.lt.s32.totalorder %s52_s21, %s52_s21 }
   0xf   :  { %p1819_p5 = scmp.ne.s32.totalorder %s52_s21, %s1818_s25  ;;  %p1824_p7 = scmp.lt.s32.totalorder %s1818_s25, %s1818_s25 }
  0x11   :  { %p1825_p8 = por %p1824_p7, %p1823_p6 }
  0x13   :  { %p1826_p9 = pnand %p1825_p8, %p1819_p5 }
  0x15   :  { %1829 = shalt.err (!%p1826_p9)
}
  0x16   :  { %s1920_s26 = smov 128   ;;  %s1921_s27 = smov 8  }
  0x17   :  { %57 = dma.hbm_to_vmem [thread:$0]  %s2211_s3, 2560, %s52_s21, [#allocation10], %s1920_s26, %s1920_s26, %s1921_s27  }
  0x18   :  { %s1922_s30 = smov [#allocation3]   ;;  %s1923_s7 = smov [#allocation8]  }
  0x19   :  { %s20_s6 = sshll.u32 %s1922_s30, 4  ;;  %s39_s1 = sshll.u32 %s1923_s7, 4  ;;  %s21_s6 = int_to_ptr.vmem [resolvable:$true] %s20_s6  ;;  %s40_s1 = int_to_ptr.vmem [resolvable:$true] %s39_s1 }
  0x1a   :  { %s1838_s8 = scalar_lea.vmem %s21_s6, 64  ;;  %p1843_p11 = scmp.lt.s32.totalorder %s21_s6, %s21_s6 }
  0x1b   :  { %p1839_p10 = scmp.ne.s32.totalorder %s21_s6, %s1838_s8  ;;  %p1844_p12 = scmp.lt.s32.totalorder %s1838_s8, %s1838_s8 }
  0x1d   :  { %p1845_p13 = por %p1844_p12, %p1843_p11 }
  0x1f   :  { %p1846_p0 = pnand %p1845_p13, %p1839_p10 }
  0x21   :  { %1849 = shalt.err (!%p1846_p0)
}
  0x22   :  { %23 = dma.hbm_to_vmem [thread:$0]  %s2208_s0, 64, %s21_s6, [#allocation4]  }
  0x23   :  { %s1858_s11 = scalar_lea.vmem %s40_s1, 1920  ;;  %p1863_p2 = scmp.lt.s32.totalorder %s40_s1, %s40_s1 }
  0x24   :  { %p1859_p1 = scmp.ne.s32.totalorder %s40_s1, %s1858_s11  ;;  %p1864_p3 = scmp.lt.s32.totalorder %s1858_s11, %s1858_s11 }
  0x26   :  { %p1865_p4 = por %p1864_p3, %p1863_p2 }
  0x28   :  { %p1866_p5 = pnand %p1865_p4, %p1859_p1 }
  0x2a   :  { %1869 = shalt.err (!%p1866_p5)
}
  0x2b   :  { %s1924_s3 = smov 640   ;;  %s1925_s12 = smov 40  }
  0x2c   :  { %45 = dma.hbm_to_vmem [thread:$0]  %s2210_s2, 1920, %s40_s1, [#allocation7], %s1924_s3, %s1924_s3, %s1925_s12  }
  0x2d   :  { %s1926_s15 = smov [#allocation11]  }
  0x2e   :  { %s63_s16 = sshll.u32 %s1926_s15, 4  ;;  %s64_s16 = int_to_ptr.vmem [resolvable:$true] %s63_s16 }
  0x2f   :  { %s1878_s17 = scalar_lea.vmem %s64_s16, 5760  ;;  %p1883_p7 = scmp.lt.s32.totalorder %s64_s16, %s64_s16 }
  0x30   :  { %p1879_p6 = scmp.ne.s32.totalorder %s64_s16, %s1878_s17  ;;  %p1884_p8 = scmp.lt.s32.totalorder %s1878_s17, %s1878_s17 }
  0x32   :  { %p1885_p9 = por %p1884_p8, %p1883_p7 }
  0x34   :  { %p1886_p10 = pnand %p1885_p9, %p1879_p6 }
  0x36   :  { %1889 = shalt.err (!%p1886_p10)
}
  0x37   :  { %69 = dma.hbm_to_vmem [thread:$0]  %s2212_s4, 5760, %s64_s16, [#allocation10], %s1920_s26, %s1920_s26, %s1921_s27  }
  0x38   :  { %1910 = dma.done.wait [#allocation4], 64  }
  0x39   :  { %1911 = vsyncadd [#allocation4], 4294967232 }
  0x3a   :  { %1912 = dma.done.wait [#allocation7], 1984  }
  0x3b   :  { %1913 = vsyncadd [#allocation7], 4294965312 }
  0x3c   :  { %1914 = dma.done.wait [#allocation10], 8320  }
  0x3d   :  { %1915 = vsyncadd [#allocation10], 4294958976  ;;  %v1927_v0 = vmov 0.0   ;;  %vm107_vm0 = vcmask 1044480   ;;  %v101_v1 = vld [vmem:[#allocation8 + $0x68] sm:$0x1f] }
  0x3e   :  { %258 = vmatprep.mubr.f32.mxu1 %v1927_v0  ;;  %187 = vmatprep.mubr.f32.mxu0 %v1927_v0  ;;  %v100_v2 = vld [vmem:[#allocation8 + $0x60] sm:$0x1f]  ;;  %v95_v4 = vld [vmem:[#allocation8 + $0x38] sm:$0xff]  ;;  %vm86_vm1 = vcmask 162816   ;;  %v98_v8 = vld [vmem:[#allocation8 + $0x50] sm:$0x1f] }
  0x3f   :  { %v96_v3 = vld [vmem:[#allocation8 + $0x40] sm:$0xff]  ;;  %1466 = vmatprep.subr.msk.mxu1 %vm107_vm0, %v101_v1  ;;  %v91_v5 = vld [vmem:[#allocation8 + $0x18] sm:$0xff]  ;;  %v90_v9 = vld [vmem:[#allocation8 + $0x10] sm:$0xff]  ;;  %vm103_vm2 = vcmask 171008   ;;  %vm1928_vm3 = vmmov 0   ;;  %vm342_vm4 = vcmask 261120  }
  0x40   :  { %1467 = vmatpush1.msk.msra.mxu1 %vm107_vm0, %v100_v2  ;;  %v99_v6 = vld [vmem:[#allocation8 + $0x58] sm:$0x1f]  ;;  %v94_v10 = vld [vmem:[#allocation8 + $0x30] sm:$0xff]  ;;  %v93_v11 = vld [vmem:[#allocation8 + $0x28] sm:$0xff]  ;;  %s1929_s2 = smov 64   ;;  %s1930_s4 = smov 32  }
  0x41   :  { %v85_v7 = vld [vmem:[#allocation3] sm:$0xf]  ;;  %222 = vmatprep.subr.mxu1 %v96_v3  ;;  %1463 = vmatprep.subr.msk.mxu0 %vm107_vm0, %v99_v6  ;;  %v341_v13 = vld [vmem:[#allocation9 + $0x18] sm:$0xff]  ;;  %v89_v14 = vld [vmem:[#allocation8 + $0x8] sm:$0xff]  ;;  %vm461_vm5 = vcmask 1040384   ;;  %vm335_vm6 = vcmask 527872  }
  0x42   :  { %223 = vmatpush1.msra.mxu1 %v95_v4  ;;  %v1990_v12 = vsel %vm86_vm1, %v85_v7, 1.0  ;;  %1464 = vmatpush1.msk.msra.mxu0 %vm107_vm0, %v98_v8  ;;  %v88_v15 = vld [vmem:[#allocation8] sm:$0xff]  ;;  %v340_v16 = vld [vmem:[#allocation9 + $0x10] sm:$0xff]  ;;  %v338_v18 = vld [vmem:[#allocation9] sm:$0xff]  ;;  %v1931_v46 = vmov 1.0   ;;  %s1932_s19 = smov 96  }
  0x43   :  { %224 = vmatprep.subr.mxu1 %v91_v5  ;;  %151 = vmatprep.subr.mxu0 %v94_v10  ;;  %v339_v17 = vld [vmem:[#allocation9 + $0x8] sm:$0xff]  ;;  %v2002_v19 = vld [vmem:[#allocation6] sm:$0xf]  ;;  %v102_v32 = vld [vmem:[#allocation8 + $0x70] sm:$0x1f]  ;;  %vm440_vm7 = vcmask 257024  }
  0x44   :  { %225 = vmatpush1.msra.mxu1 %v90_v9  ;;  %152 = vmatpush1.msra.mxu0 %v93_v11  ;;  %v97_v33 = vld [vmem:[#allocation8 + $0x48] sm:$0xff]  ;;  %v566_v34 = vld [vmem:[#allocation9 + $0x38] sm:$0xff]  ;;  %v92_v35 = vld [vmem:[#allocation8 + $0x20] sm:$0xff]  ;;  %336 = vst.msk [vmem:[#allocation2] sm:$0xf] %vm335_vm6, %v1931_v46  ;;  %vm445_vm8 = vcmask 519424  }
  0x45   :  { %1468 = vmatmul.mubr.msk.f32.vlgmr.msra.gmra.mxu1 %vm103_vm2, %v1990_v12  ;;  %1574 = vmatprep.subr.mxu1 %v1927_v0  ;;  %v565_v36 = vld [vmem:[#allocation9 + $0x30] sm:$0xff]  ;;  %v456_v37 = vld [vmem:[#allocation11 + $0x40] sm:$0x1]  ;;  %v455_v38 = vld [vmem:[#allocation11 + $0x38] sm:$0xff]  ;;  %vm457_vm9 = vcmask 531456   ;;  %vm1003_vm10 = vcmask 781824  }
  0x46   :  { %1575 = vmatpush3.msra.mxu1 %v341_v13  ;;  %153 = vmatprep.subr.mxu0 %v89_v14  ;;  %v454_v41 = vld [vmem:[#allocation11 + $0x30] sm:$0xff]  ;;  %v564_v42 = vld [vmem:[#allocation9 + $0x28] sm:$0xff]  ;;  %v563_v44 = vld [vmem:[#allocation9 + $0x20] sm:$0xff]  ;;  %s1933_s20 = smov [#allocation12]   ;;  %vm1226_vm11 = vcmask 1044224  }
  0x47   :  { %1576 = vmatprep.subr.mxu1 %v1927_v0  ;;  %154 = vmatpush1.msra.mxu0 %v88_v15  ;;  %v453_v43 = vld [vmem:[#allocation11 + $0x28] sm:$0xff]  ;;  %v452_v45 = vld [vmem:[#allocation11 + $0x20] sm:$0xff]  ;;  %v451_v47 = vld [vmem:[#allocation11 + $0x18] sm:$0xff]  ;;  %s1452_s21 = sshll.u32 %s1933_s20, 4  ;;  %s1453_s21 = int_to_ptr.vmem [resolvable:$true] %s1452_s21 }
  0x48   :  { %1577 = vmatpush3.msra.mxu1 %v340_v16  ;;  %1465 = vmatmul.mubr.msk.f32.vlgmr.msra.gmra.mxu0 %vm103_vm2, %v1990_v12  ;;  %v450_v48 = vld [vmem:[#allocation11 + $0x10] sm:$0xff]  ;;  %v449_v49 = vld [vmem:[#allocation11 + $0x8] sm:$0xff]  ;;  %v448_v50 = vld [vmem:[#allocation11] sm:$0xff]  ;;  %s1890_s22 = scalar_lea.vmem %s1453_s21, 128  ;;  %p1895_p12 = scmp.lt.s32.totalorder %s1453_s21, %s1453_s21 }
  0x49   :  { %1578 = vmatprep.subr.mxu1 %v1927_v0  ;;  %1582 = vmatprep.mubr.msk.f32.mxu1 %vm1928_vm3, %v1927_v0  ;;  %p1891_p11 = scmp.ne.s32.totalorder %s1453_s21, %s1890_s22  ;;  %p1896_p13 = scmp.lt.s32.totalorder %s1890_s22, %s1890_s22 }
  0x4a   :  { %1579 = vmatpush3.msra.mxu1 %v339_v17  ;;  %1565 = vmatprep.subr.mxu0 %v1927_v0 }
  0x4b   :  { %1580 = vmatprep.subr.mxu1 %v1927_v0  ;;  %1571 = vmatprep.mubr.msk.f32.mxu0 %vm1928_vm3, %v1927_v0  ;;  %p1897_p0 = por %p1896_p13, %p1895_p12 }
  0x4c   :  { %1581 = vmatpush3.msra.mxu1 %v338_v18  ;;  %1566 = vmatpush3.msk.msra.mxu0 %vm107_vm0, %v102_v32  ;;  %v674_v32 = vld [vmem:[#allocation11 + $0x58] sm:$0xff] }
  0x4d   :  { %1583 = vmatmul.mubr.msk.f32.vlgmr.msra.gmra.mxu1 %vm342_vm4, %v2002_v19  ;;  %1606 = vmatprep.subr.mxu1 %v1927_v0  ;;  %p1898_p1 = pnand %p1897_p0, %p1891_p11 }
  0x4e   :  { %1614 = vmatprep.mubr.msk.f32.mxu1 %vm1928_vm3, %v1927_v0  ;;  %1567 = vmatprep.subr.mxu0 %v1927_v0 }
  0x4f   :  { %1607 = vmatpush3.msra.mxu1 %v566_v34  ;;  %1568 = vmatpush3.msra.mxu0 %v97_v33  ;;  %v673_v34 = vld [vmem:[#allocation11 + $0x50] sm:$0xff] }
  0x50   :  { %1608 = vmatprep.subr.mxu1 %v1927_v0  ;;  %1569 = vmatprep.subr.mxu0 %v1927_v0 }
  0x51   :  { %1609 = vmatpush3.msra.mxu1 %v565_v36  ;;  %1570 = vmatpush3.msra.mxu0 %v92_v35 }
  0x52   :  { %1610 = vmatprep.subr.mxu1 %v1927_v0  ;;  %1572 = vmatmul.mubr.msk.f32.vlgmr.msra.gmra.mxu0 %vm103_vm2, %v1990_v12 }
  0x53   :  { %1585 = vmatprep.subr.mxu0 %v1927_v0  ;;  %1603 = vmatprep.mubr.msk.f32.mxu0 %vm1928_vm3, %v1927_v0 }
  0x54   :  { %1586 = vmatpush3.msk.msra.mxu0 %vm461_vm5, %v456_v37  ;;  %1611 = vmatpush3.msra.mxu1 %v564_v42  ;;  %v672_v37 = vld [vmem:[#allocation11 + $0x48] sm:$0xff] }
  0x55   :  { %1587 = vmatprep.subr.mxu0 %v1927_v0  ;;  %1612 = vmatprep.subr.mxu1 %v1927_v0 }
  0x56   :  { %1588 = vmatpush3.msra.mxu0 %v455_v38  ;;  %1613 = vmatpush3.msra.mxu1 %v563_v44 }
  0x57   :  { %1589 = vmatprep.subr.mxu0 %v1927_v0  ;;  %1617 = vmatprep.subr.mxu1 %v1927_v0 }
  0x58   :  { %1590 = vmatpush3.msra.mxu0 %v454_v41 }
  0x59   :  { %1591 = vmatprep.subr.mxu0 %v1927_v0 }
  0x5a   :  { %1592 = vmatpush3.msra.mxu0 %v453_v43 }
  0x5b   :  { %1593 = vmatprep.subr.mxu0 %v1927_v0 }
  0x5c   :  { %1594 = vmatpush3.msra.mxu0 %v452_v45  ;;  %v789_v45 = vld [vmem:[#allocation9 + $0x58] sm:$0xff] }
  0x5d   :  { %1595 = vmatprep.subr.mxu0 %v1927_v0 }
  0x5e   :  { %1596 = vmatpush3.msra.mxu0 %v451_v47  ;;  %v788_v47 = vld [vmem:[#allocation9 + $0x50] sm:$0xff] }
  0x5f   :  { %1597 = vmatprep.subr.mxu0 %v1927_v0 }
  0x60   :  { %1598 = vmatpush3.msra.mxu0 %v450_v48  ;;  %v787_v48 = vld [vmem:[#allocation9 + $0x48] sm:$0xff] }
  0x61   :  { %1599 = vmatprep.subr.mxu0 %v1927_v0 }
  0x62   :  { %1600 = vmatpush3.msra.mxu0 %v449_v49  ;;  %v786_v49 = vld [vmem:[#allocation9 + $0x40] sm:$0xff] }
  0x63   :  { %1601 = vmatprep.subr.mxu0 %v1927_v0 }
  0x64   :  { %1602 = vmatpush3.msra.mxu0 %v448_v50 }
  0x65   :  { %1649 = vmatprep.subr.mxu0 %v1927_v0 }
 0x105   :  { %v2013_v20 = vpop.f32.mrf.mxu1 }
 0x107   :  { %v2015_v21 = vpop.f32.mrf.mxu1 }
 0x108   :  { %v189_v22 = vpop.f32.mrf.mxu0 }
 0x10a   :  { %v191_v52 = vpop.f32.mrf.mxu0 }
 0x10d   :  { %v412_v23 = vpop.f32.mrf.mxu1 }
 0x10e   :  { %v416_v24 = vadd.f32 %v412_v23, %v189_v22  ;;  %v680_v23 = vld [vmem:[#allocation11 + $0x88] sm:$0x1] }
 0x10f   :  { %v1584_v25 = vpop.f32.mrf.mxu1 }
 0x110   :  { %422 = vrot.lane.b32.xlu0 %v416_v24, %s1929_s2  ;;  %v417_v26 = vmul.f32 0.5, %v416_v24 }
 0x112   :  { %1750 = vtanh.f32 %v417_v26  ;;  %v2047_v53 = vpop.f32.mrf.mxu0  ;;  %v678_v26 = vld [vmem:[#allocation11 + $0x78] sm:$0xff] }
 0x114   :  { %v1573_v54 = vpop.f32.mrf.mxu0 }
 0x11f   :  { %v1751_v27 = vpop.eup %1750 }
 0x120   :  { %v419_v28 = vmul.f32 0.5, %v1751_v27  ;;  %v676_v27 = vld [vmem:[#allocation11 + $0x68] sm:$0xff] }
 0x122   :  { %v2018_v29 = vadd.f32 0.5, %v419_v28 }
 0x124   :  { %v432_v55 = vsub.f32 1.0, %v2018_v29 }
 0x126   :  { %v433_v57 = vmul.f32 %v432_v55, %v2002_v19 }
 0x182   :  { %v423_v30 = vpop.permute.xlu0 %422 }
 0x183   :  { %v425_v31 = vmul.f32 %v423_v30, %v2018_v29 }
 0x185   :  { %427 = vrot.lane.b32.xlu0 %v425_v31, %s1930_s4  ;;  %v675_v31 = vld [vmem:[#allocation11 + $0x60] sm:$0xff] }
 0x1f7   :  { %v428_v39 = vpop.permute.xlu0 %427 }
 0x1f8   :  { %v430_v40 = vadd.f32 %v428_v39, %v416_v24  ;;  %v679_v24 = vld [vmem:[#allocation11 + $0x80] sm:$0xff] }
 0x1fa   :  { %1752 = vtanh.f32 %v430_v40 }
 0x207   :  { %v1753_v51 = vpop.eup %1752 }
 0x208   :  { %435 = vrot.lane.b32.xlu1 %v1753_v51, %s1929_s2 }
 0x20c   :  { %442 = vrot.lane.b32.xlu1 %v2002_v19, %s1932_s19 }
 0x27a   :  { %v436_v56 = vpop.permute.xlu1 %435 }
 0x27b   :  { %v438_v58 = vmul.f32 %v436_v56, %v2018_v29 }
 0x27d   :  { %v2052_v59 = vadd.f32 %v438_v58, %v433_v57 }
 0x27e   :  { %v443_v60 = vpop.permute.xlu1 %442 }
 0x27f   :  { %1615 = vmatmul.mubr.msk.f32.vlgmr.msra.gmra.mxu1 %vm342_vm4, %v2052_v59  ;;  %441 = vst.msk [vmem:[#allocation2] sm:$0xf] %vm440_vm7, %v2052_v59 }
 0x280   :  { %446 = vst.msk [vmem:[#allocation2] sm:$0xf] %vm445_vm8, %v443_v60  ;;  %1635 = vmatprep.mubr.msk.f32.mxu1 %vm1928_vm3, %v1927_v0  ;;  %1618 = vmatpush3.msk.msra.mxu1 %vm461_vm5, %v680_v23  ;;  %v893_v23 = vld [vmem:[#allocation11 + $0xa0] sm:$0xff] }
 0x281   :  { %1619 = vmatprep.subr.mxu1 %v1927_v0 }
 0x282   :  { %1620 = vmatpush3.msra.mxu1 %v679_v24  ;;  %v892_v24 = vld [vmem:[#allocation11 + $0x98] sm:$0xff] }
 0x283   :  { %1621 = vmatprep.subr.mxu1 %v1927_v0 }
 0x284   :  { %1622 = vmatpush3.msra.mxu1 %v678_v26 }
 0x285   :  { %1623 = vmatprep.subr.mxu1 %v1927_v0 }
 0x287   :  { %v447_v61 = vld [vmem:[#allocation2] sm:$0xf] }
 0x288   :  { %1604 = vmatmul.mubr.msk.f32.vlgmr.msra.gmra.mxu0 %vm457_vm9, %v447_v61 }
 0x289   :  { %1667 = vmatprep.mubr.msk.f32.mxu0 %vm1928_vm3, %v1927_v0 }
 0x33f   :  { %v636_v62 = vpop.f32.mrf.mxu1 }
 0x340   :  { %v640_v63 = vadd.f32 %v636_v62, %v191_v52 }
 0x341   :  { %v1616_v1 = vpop.f32.mrf.mxu1 }
 0x342   :  { %646 = vrot.lane.b32.xlu1 %v640_v63, %s1929_s2  ;;  %v641_v4 = vmul.f32 0.5, %v640_v63 }
 0x344   :  { %1754 = vtanh.f32 %v641_v4 }
 0x348   :  { %v531_v2 = vpop.f32.mrf.mxu0 }
 0x349   :  { %540 = vrot.lane.b32.xlu0 %v531_v2, %s1929_s2  ;;  %v535_v5 = vmul.f32 0.5, %v531_v2 }
 0x34a   :  { %v1605_v3 = vpop.f32.mrf.mxu0 }
 0x34b   :  { %1756 = vtanh.f32 %v535_v5 }
 0x351   :  { %v1755_v6 = vpop.eup %1754 }
 0x352   :  { %v643_v7 = vmul.f32 0.5, %v1755_v6  ;;  %v1009_v6 = vld [vmem:[#allocation9 + $0x78] sm:$0xff] }
 0x354   :  { %v644_v9 = vadd.f32 0.5, %v643_v7  ;;  %v1008_v7 = vld [vmem:[#allocation9 + $0x70] sm:$0xff] }
 0x356   :  { %v656_v30 = vsub.f32 1.0, %v644_v9 }
 0x358   :  { %v1757_v8 = vpop.eup %1756  ;;  %v657_v35 = vmul.f32 %v656_v30, %v2052_v59 }
 0x359   :  { %v537_v12 = vmul.f32 0.5, %v1757_v8 }
 0x35b   :  { %v538_v13 = vadd.f32 0.5, %v537_v12  ;;  %v1006_v12 = vld [vmem:[#allocation9 + $0x60] sm:$0xff] }
 0x35d   :  { %v550_v39 = vsub.f32 1.0, %v538_v13 }
 0x3b4   :  { %v647_v10 = vpop.permute.xlu1 %646 }
 0x3b5   :  { %v649_v11 = vmul.f32 %v647_v10, %v644_v9  ;;  %v1007_v10 = vld [vmem:[#allocation9 + $0x68] sm:$0xff] }
 0x3b7   :  { %651 = vrot.lane.b32.xlu1 %v649_v11, %s1930_s4 }
 0x3bb   :  { %v541_v14 = vpop.permute.xlu0 %540 }
 0x3bc   :  { %v543_v15 = vmul.f32 %v541_v14, %v538_v13  ;;  %v898_v14 = vld [vmem:[#allocation11 + $0xc8] sm:$0xff] }
 0x3be   :  { %545 = vrot.lane.b32.xlu0 %v543_v15, %s1930_s4  ;;  %v897_v15 = vld [vmem:[#allocation11 + $0xc0] sm:$0xff] }
 0x3c2   :  { %551 = vrot.lane.b32.xlu0 %v2002_v19, %s1929_s2  ;;  %v677_v19 = vld [vmem:[#allocation11 + $0x70] sm:$0xff] }
 0x3c3   :  { %1624 = vmatpush3.msra.mxu1 %v677_v19 }
 0x3c4   :  { %1625 = vmatprep.subr.mxu1 %v1927_v0 }
 0x3c5   :  { %1626 = vmatpush3.msra.mxu1 %v676_v27 }
 0x3c6   :  { %1627 = vmatprep.subr.mxu1 %v1927_v0 }
 0x3c7   :  { %1628 = vmatpush3.msra.mxu1 %v675_v31 }
 0x3c8   :  { %1629 = vmatprep.subr.mxu1 %v1927_v0 }
 0x3c9   :  { %1630 = vmatpush3.msra.mxu1 %v674_v32 }
 0x3ca   :  { %1631 = vmatprep.subr.mxu1 %v1927_v0 }
 0x3cb   :  { %1632 = vmatpush3.msra.mxu1 %v673_v34 }
 0x3cc   :  { %1633 = vmatprep.subr.mxu1 %v1927_v0 }
 0x3cd   :  { %1634 = vmatpush3.msra.mxu1 %v672_v37 }
 0x3ce   :  { %1638 = vmatprep.subr.mxu1 %v1927_v0 }
 0x429   :  { %v652_v16 = vpop.permute.xlu1 %651 }
 0x42a   :  { %v654_v17 = vadd.f32 %v652_v16, %v640_v63  ;;  %v896_v16 = vld [vmem:[#allocation11 + $0xb8] sm:$0xff] }
 0x42c   :  { %1758 = vtanh.f32 %v654_v17  ;;  %v895_v17 = vld [vmem:[#allocation11 + $0xb0] sm:$0xff] }
 0x430   :  { %v546_v18 = vpop.permute.xlu0 %545 }
 0x431   :  { %v548_v22 = vadd.f32 %v546_v18, %v531_v2 }
 0x433   :  { %1760 = vtanh.f32 %v548_v22  ;;  %v894_v22 = vld [vmem:[#allocation11 + $0xa8] sm:$0xff] }
 0x434   :  { %v552_v29 = vpop.permute.xlu0 %551 }
 0x435   :  { %v554_v41 = vmul.f32 %v552_v29, %v550_v39 }
 0x439   :  { %v1759_v25 = vpop.eup %1758 }
 0x43a   :  { %659 = vrot.lane.b32.xlu0 %v1759_v25, %s1929_s2  ;;  %v891_v25 = vld [vmem:[#allocation11 + $0x90] sm:$0xff] }
 0x440   :  { %v1761_v28 = vpop.eup %1760 }
 0x441   :  { %556 = vrot.lane.b32.xlu1 %v1761_v28, %s1929_s2 }
 0x4ac   :  { %v660_v33 = vpop.permute.xlu0 %659 }
 0x4ad   :  { %v662_v36 = vmul.f32 %v660_v33, %v644_v9 }
 0x4af   :  { %v2081_v38 = vadd.f32 %v662_v36, %v657_v35 }
 0x4b1   :  { %664 = vst.msk [vmem:[#allocation2] sm:$0xf] %vm440_vm7, %v2081_v38 }
 0x4b3   :  { %v557_v40 = vpop.permute.xlu1 %556 }
 0x4b4   :  { %v559_v42 = vmul.f32 %v557_v40, %v538_v13  ;;  %v899_v13 = vld [vmem:[#allocation11 + $0xd0] sm:$0x1] }
 0x4b5   :  { %1650 = vmatpush3.msk.msra.mxu0 %vm461_vm5, %v899_v13  ;;  %v1114_v13 = vld [vmem:[#allocation11 + $0xd8] sm:$0xff] }
 0x4b6   :  { %v2087_v43 = vadd.f32 %v559_v42, %v554_v41  ;;  %1651 = vmatprep.subr.mxu0 %v1927_v0 }
 0x4b7   :  { %1652 = vmatpush3.msra.mxu0 %v898_v14 }
 0x4b8   :  { %561 = vst.msk [vmem:[#allocation12] sm:$0xf] %vm440_vm7, %v2087_v43  ;;  %666 = vrot.lane.b32.xlu1 %v2087_v43, %s1930_s4  ;;  %1653 = vmatprep.subr.mxu0 %v1927_v0 }
 0x4b9   :  { %1654 = vmatpush3.msra.mxu0 %v897_v15 }
 0x4ba   :  { %1655 = vmatprep.subr.mxu0 %v1927_v0 }
 0x4bb   :  { %1656 = vmatpush3.msra.mxu0 %v896_v16 }
 0x4bc   :  { %1657 = vmatprep.subr.mxu0 %v1927_v0 }
 0x4bd   :  { %1658 = vmatpush3.msra.mxu0 %v895_v17 }
 0x4be   :  { %1659 = vmatprep.subr.mxu0 %v1927_v0 }
 0x4bf   :  { %1660 = vmatpush3.msra.mxu0 %v894_v22 }
 0x4c0   :  { %1661 = vmatprep.subr.mxu0 %v1927_v0 }
 0x4c1   :  { %1662 = vmatpush3.msra.mxu0 %v893_v23 }
 0x4c2   :  { %1663 = vmatprep.subr.mxu0 %v1927_v0 }
 0x4c3   :  { %1664 = vmatpush3.msra.mxu0 %v892_v24 }
 0x4c4   :  { %1665 = vmatprep.subr.mxu0 %v1927_v0 }
 0x4c5   :  { %1666 = vmatpush3.msra.mxu0 %v891_v25 }
 0x4c6   :  { %1702 = vmatprep.subr.mxu0 %v1927_v0 }
 0x52a   :  { %v667_v44 = vpop.permute.xlu1 %666 }
 0x52b   :  { %669 = vst.msk [vmem:[#allocation2] sm:$0xf] %vm445_vm8, %v667_v44 }
 0x532   :  { %v670_v46 = vld [vmem:[#allocation2] sm:$0xf] }
 0x533   :  { %1636 = vmatmul.mubr.msk.f32.vlgmr.msra.gmra.mxu1 %vm457_vm9, %v670_v46 }
 0x534   :  { %1639 = vmatpush3.msra.mxu1 %v789_v45  ;;  %1646 = vmatprep.mubr.msk.f32.mxu1 %vm1928_vm3, %v1927_v0 }
 0x535   :  { %1640 = vmatprep.subr.mxu1 %v1927_v0 }
 0x536   :  { %1641 = vmatpush3.msra.mxu1 %v788_v47 }
 0x537   :  { %1642 = vmatprep.subr.mxu1 %v1927_v0 }
 0x538   :  { %1643 = vmatpush3.msra.mxu1 %v787_v48 }
 0x539   :  { %1644 = vmatprep.subr.mxu1 %v1927_v0 }
 0x53a   :  { %1645 = vmatpush3.msra.mxu1 %v786_v49 }
 0x53b   :  { %1647 = vmatmul.mubr.msk.f32.vlgmr.msra.gmra.mxu1 %vm342_vm4, %v2081_v38  ;;  %1670 = vmatprep.subr.mxu1 %v1927_v0 }
 0x53c   :  { %1678 = vmatprep.mubr.msk.f32.mxu1 %vm1928_vm3, %v1927_v0  ;;  %1671 = vmatpush3.msra.mxu1 %v1009_v6  ;;  %v1121_v6 = vld [vmem:[#allocation11 + $0x110] sm:$0xff] }
 0x53d   :  { %1672 = vmatprep.subr.mxu1 %v1927_v0 }
 0x53e   :  { %1673 = vmatpush3.msra.mxu1 %v1008_v7  ;;  %v1120_v7 = vld [vmem:[#allocation11 + $0x108] sm:$0xff] }
 0x53f   :  { %1674 = vmatprep.subr.mxu1 %v1927_v0 }
 0x540   :  { %1675 = vmatpush3.msra.mxu1 %v1007_v10  ;;  %v1117_v10 = vld [vmem:[#allocation11 + $0xf0] sm:$0xff] }
 0x541   :  { %1676 = vmatprep.subr.mxu1 %v1927_v0 }
 0x542   :  { %1677 = vmatpush3.msra.mxu1 %v1006_v12  ;;  %v1115_v12 = vld [vmem:[#allocation11 + $0xe0] sm:$0xff] }
 0x543   :  { %1681 = vmatprep.subr.mxu1 %v1927_v0 }
 0x5f3   :  { %v753_v50 = vpop.f32.mrf.mxu1 }
 0x5f4   :  { %762 = vrot.lane.b32.xlu0 %v753_v50, %s1929_s2  ;;  %v757_v56 = vmul.f32 0.5, %v753_v50 }
 0x5f5   :  { %v1637_v51 = vpop.f32.mrf.mxu1 }
 0x5f6   :  { %1762 = vtanh.f32 %v757_v56  ;;  %v1231_v56 = vld [vmem:[#allocation9 + $0x90] sm:$0xff] }
 0x5fb   :  { %v859_v52 = vpop.f32.mrf.mxu1 }
 0x5fc   :  { %v863_v54 = vadd.f32 %v859_v52, %v2013_v20 }
 0x5fd   :  { %v1648_v55 = vpop.f32.mrf.mxu1 }
 0x5fe   :  { %869 = vrot.lane.b32.xlu1 %v863_v54, %s1929_s2  ;;  %v864_v57 = vmul.f32 0.5, %v863_v54 }
 0x600   :  { %1764 = vtanh.f32 %v864_v57 }
 0x603   :  { %v1763_v58 = vpop.eup %1762 }
 0x604   :  { %v759_v59 = vmul.f32 0.5, %v1763_v58  ;;  %v1230_v58 = vld [vmem:[#allocation9 + $0x88] sm:$0xff] }
 0x606   :  { %v760_v60 = vadd.f32 0.5, %v759_v59  ;;  %v1229_v59 = vld [vmem:[#allocation9 + $0x80] sm:$0xff] }
 0x608   :  { %v772_v26 = vsub.f32 1.0, %v760_v60 }
 0x60a   :  { %v773_v27 = vmul.f32 %v772_v26, %v2087_v43 }
 0x60d   :  { %v1765_v63 = vpop.eup %1764 }
 0x60e   :  { %v866_v1 = vmul.f32 0.5, %v1765_v63 }
 0x610   :  { %v867_v2 = vadd.f32 0.5, %v866_v1 }
 0x612   :  { %v879_v30 = vsub.f32 1.0, %v867_v2 }
 0x614   :  { %v880_v32 = vmul.f32 %v879_v30, %v2081_v38 }
 0x666   :  { %v763_v61 = vpop.permute.xlu0 %762 }
 0x667   :  { %v765_v62 = vmul.f32 %v763_v61, %v760_v60 }
 0x669   :  { %767 = vrot.lane.b32.xlu0 %v765_v62, %s1930_s4 }
 0x670   :  { %v870_v3 = vpop.permute.xlu1 %869 }
 0x671   :  { %v872_v4 = vmul.f32 %v870_v3, %v867_v2 }
 0x673   :  { %874 = vrot.lane.b32.xlu1 %v872_v4, %s1930_s4 }
 0x6db   :  { %v768_v20 = vpop.permute.xlu0 %767 }
 0x6dc   :  { %v770_v5 = vadd.f32 %v768_v20, %v753_v50 }
 0x6de   :  { %1766 = vtanh.f32 %v770_v5  ;;  %v1122_v5 = vld [vmem:[#allocation11 + $0x118] sm:$0x1] }
 0x6e5   :  { %v875_v8 = vpop.permute.xlu1 %874 }
 0x6e6   :  { %v877_v9 = vadd.f32 %v875_v8, %v863_v54  ;;  %v1119_v8 = vld [vmem:[#allocation11 + $0x100] sm:$0xff] }
 0x6e8   :  { %1768 = vtanh.f32 %v877_v9  ;;  %v1118_v9 = vld [vmem:[#allocation11 + $0xf8] sm:$0xff] }
 0x6eb   :  { %v1767_v11 = vpop.eup %1766 }
 0x6ec   :  { %775 = vrot.lane.b32.xlu0 %v1767_v11, %s1929_s2  ;;  %v1116_v11 = vld [vmem:[#allocation11 + $0xe8] sm:$0xff] }
 0x6f5   :  { %v1769_v18 = vpop.eup %1768 }
 0x6f6   :  { %882 = vrot.lane.b32.xlu1 %v1769_v18, %s1929_s2 }
 0x75e   :  { %v776_v19 = vpop.permute.xlu0 %775 }
 0x75f   :  { %v778_v28 = vmul.f32 %v776_v19, %v760_v60 }
 0x761   :  { %v2127_v29 = vadd.f32 %v778_v28, %v773_v27 }
 0x763   :  { %781 = vrot.lane.b32.xlu0 %v2127_v29, %s1930_s4 }
 0x768   :  { %v883_v31 = vpop.permute.xlu1 %882 }
 0x769   :  { %v885_v33 = vmul.f32 %v883_v31, %v867_v2 }
 0x76b   :  { %v886_v34 = vadd.f32 %v885_v33, %v880_v32 }
 0x76d   :  { %887 = vst.msk [vmem:[#allocation2] sm:$0xf] %vm440_vm7, %v886_v34  ;;  %1679 = vmatmul.mubr.msk.f32.vlgmr.msra.gmra.mxu1 %vm342_vm4, %v886_v34 }
 0x76e   :  { %1699 = vmatprep.mubr.msk.f32.mxu1 %vm1928_vm3, %v1927_v0  ;;  %1682 = vmatpush3.msk.msra.mxu1 %vm461_vm5, %v1122_v5 }
 0x76f   :  { %1683 = vmatprep.subr.mxu1 %v1927_v0 }
 0x770   :  { %1684 = vmatpush3.msra.mxu1 %v1121_v6 }
 0x771   :  { %1685 = vmatprep.subr.mxu1 %v1927_v0 }
 0x772   :  { %1686 = vmatpush3.msra.mxu1 %v1120_v7 }
 0x773   :  { %1687 = vmatprep.subr.mxu1 %v1927_v0 }
 0x774   :  { %1688 = vmatpush3.msra.mxu1 %v1119_v8 }
 0x775   :  { %1689 = vmatprep.subr.mxu1 %v1927_v0 }
 0x776   :  { %1690 = vmatpush3.msra.mxu1 %v1118_v9 }
 0x777   :  { %1691 = vmatprep.subr.mxu1 %v1927_v0 }
 0x778   :  { %1692 = vmatpush3.msra.mxu1 %v1117_v10 }
 0x779   :  { %1693 = vmatprep.subr.mxu1 %v1927_v0 }
 0x77a   :  { %1694 = vmatpush3.msra.mxu1 %v1116_v11 }
 0x77b   :  { %1695 = vmatprep.subr.mxu1 %v1927_v0 }
 0x77c   :  { %1696 = vmatpush3.msra.mxu1 %v1115_v12 }
 0x77d   :  { %1697 = vmatprep.subr.mxu1 %v1927_v0 }
 0x77e   :  { %1698 = vmatpush3.msra.mxu1 %v1114_v13 }
 0x7d5   :  { %v782_v35 = vpop.permute.xlu0 %781 }
 0x7d6   :  { %784 = vst.msk [vmem:[#allocation12] sm:$0xf] %vm445_vm8, %v782_v35  ;;  %888 = vst.msk [vmem:[#allocation2] sm:$0xf] %vm445_vm8, %v782_v35 }
 0x7dd   :  { %v889_v36 = vld [vmem:[#allocation2] sm:$0xf] }
 0x7de   :  { %1668 = vmatmul.mubr.msk.f32.vlgmr.msra.gmra.mxu0 %vm457_vm9, %v889_v36 }
 0x7df   :  { %1710 = vmatprep.mubr.msk.f32.mxu0 %vm1928_vm3, %v1927_v0 }
 0x82d   :  { %v1079_v37 = vpop.f32.mrf.mxu1 }
 0x82e   :  { %v1083_v38 = vadd.f32 %v1079_v37, %v2015_v21  ;;  %v1232_v21 = vld [vmem:[#allocation9 + $0x98] sm:$0xff] }
 0x82f   :  { %v1680_v39 = vpop.f32.mrf.mxu1  ;;  %1703 = vmatpush3.msra.mxu0 %v1232_v21  ;;  %v1344_v21 = vld [vmem:[#allocation11 + $0x158] sm:$0xff] }
 0x830   :  { %1089 = vrot.lane.b32.xlu0 %v1083_v38, %s1929_s2  ;;  %v1084_v40 = vmul.f32 0.5, %v1083_v38  ;;  %1704 = vmatprep.subr.mxu0 %v1927_v0 }
 0x831   :  { %1705 = vmatpush3.msra.mxu0 %v1231_v56  ;;  %v1339_v56 = vld [vmem:[#allocation11 + $0x130] sm:$0xff] }
 0x832   :  { %1770 = vtanh.f32 %v1084_v40  ;;  %1706 = vmatprep.subr.mxu0 %v1927_v0 }
 0x833   :  { %1707 = vmatpush3.msra.mxu0 %v1230_v58  ;;  %v1337_v58 = vld [vmem:[#allocation11 + $0x120] sm:$0xff] }
 0x834   :  { %1708 = vmatprep.subr.mxu0 %v1927_v0 }
 0x835   :  { %1709 = vmatpush3.msra.mxu0 %v1229_v59 }
 0x836   :  { %1713 = vmatprep.subr.mxu0 %v1927_v0 }
 0x83f   :  { %v1771_v41 = vpop.eup %1770 }
 0x840   :  { %v1086_v42 = vmul.f32 0.5, %v1771_v41 }
 0x842   :  { %v1087_v45 = vadd.f32 0.5, %v1086_v42 }
 0x844   :  { %v1099_v1 = vsub.f32 1.0, %v1087_v45 }
 0x846   :  { %v1100_v3 = vmul.f32 %v1099_v1, %v886_v34 }
 0x89e   :  { %v972_v43 = vpop.f32.mrf.mxu0 }
 0x89f   :  { %981 = vrot.lane.b32.xlu1 %v972_v43, %s1929_s2  ;;  %v976_v48 = vmul.f32 0.5, %v972_v43 }
 0x8a0   :  { %v1669_v44 = vpop.f32.mrf.mxu0 }
 0x8a1   :  { %1772 = vtanh.f32 %v976_v48 }
 0x8a2   :  { %v1090_v46 = vpop.permute.xlu0 %1089 }
 0x8a3   :  { %v1092_v47 = vmul.f32 %v1090_v46, %v1087_v45 }
 0x8a5   :  { %1094 = vrot.lane.b32.xlu0 %v1092_v47, %s1930_s4 }
 0x8ae   :  { %v1773_v49 = vpop.eup %1772 }
 0x8af   :  { %v978_v50 = vmul.f32 0.5, %v1773_v49  ;;  %v1345_v49 = vld [vmem:[#allocation11 + $0x160] sm:$0x1] }
 0x8b1   :  { %v979_v51 = vadd.f32 0.5, %v978_v50  ;;  %v1343_v50 = vld [vmem:[#allocation11 + $0x150] sm:$0xff] }
 0x8b3   :  { %v991_v14 = vsub.f32 1.0, %v979_v51 }
 0x8b5   :  { %v992_v16 = vmul.f32 %v991_v14, %v2127_v29 }
 0x911   :  { %v982_v52 = vpop.permute.xlu1 %981 }
 0x912   :  { %v984_v54 = vmul.f32 %v982_v52, %v979_v51  ;;  %v1341_v52 = vld [vmem:[#allocation11 + $0x140] sm:$0xff] }
 0x914   :  { %986 = vrot.lane.b32.xlu1 %v984_v54, %s1930_s4 }
 0x917   :  { %v1095_v55 = vpop.permute.xlu0 %1094 }
 0x918   :  { %v1097_v57 = vadd.f32 %v1095_v55, %v1083_v38  ;;  %v1340_v55 = vld [vmem:[#allocation11 + $0x138] sm:$0xff] }
 0x91a   :  { %1774 = vtanh.f32 %v1097_v57  ;;  %v1338_v57 = vld [vmem:[#allocation11 + $0x128] sm:$0xff] }
 0x927   :  { %v1775_v60 = vpop.eup %1774 }
 0x928   :  { %1102 = vrot.lane.b32.xlu0 %v1775_v60, %s1929_s2 }
 0x986   :  { %v987_v61 = vpop.permute.xlu1 %986 }
 0x987   :  { %v989_v62 = vadd.f32 %v987_v61, %v972_v43 }
 0x989   :  { %1776 = vtanh.f32 %v989_v62 }
 0x996   :  { %v1777_v63 = vpop.eup %1776 }
 0x997   :  { %994 = vrot.lane.b32.xlu1 %v1777_v63, %s1929_s2 }
 0x99a   :  { %v1103_v2 = vpop.permute.xlu0 %1102 }
 0x99b   :  { %v1105_v4 = vmul.f32 %v1103_v2, %v1087_v45 }
 0x99d   :  { %v2152_v20 = vadd.f32 %v1105_v4, %v1100_v3 }
 0x99f   :  { %1107 = vst.msk [vmem:[#allocation2] sm:$0xf] %vm440_vm7, %v2152_v20  ;;  %1711 = vmatmul.mubr.msk.f32.vlgmr.msra.gmra.mxu0 %vm342_vm4, %v2152_v20 }
 0x9a0   :  { %1731 = vmatprep.mubr.msk.f32.mxu0 %vm1928_vm3, %v1927_v0  ;;  %1714 = vmatpush3.msk.msra.mxu0 %vm461_vm5, %v1345_v49 }
 0x9a1   :  { %1715 = vmatprep.subr.mxu0 %v1927_v0 }
 0x9a2   :  { %1716 = vmatpush3.msra.mxu0 %v1344_v21 }
 0x9a3   :  { %1717 = vmatprep.subr.mxu0 %v1927_v0 }
 0x9a4   :  { %1718 = vmatpush3.msra.mxu0 %v1343_v50 }
 0x9a5   :  { %1719 = vmatprep.subr.mxu0 %v1927_v0 }
 0xa09   :  { %v995_v15 = vpop.permute.xlu1 %994 }
 0xa0a   :  { %v997_v17 = vmul.f32 %v995_v15, %v979_v51  ;;  %v1342_v51 = vld [vmem:[#allocation11 + $0x148] sm:$0xff] }
 0xa0b   :  { %1720 = vmatpush3.msra.mxu0 %v1342_v51 }
 0xa0c   :  { %v2170_v18 = vadd.f32 %v997_v17, %v992_v16  ;;  %1721 = vmatprep.subr.mxu0 %v1927_v0 }
 0xa0d   :  { %1722 = vmatpush3.msra.mxu0 %v1341_v52 }
 0xa0e   :  { %1108 = vrot.lane.b32.xlu1 %v2170_v18, %s1930_s4  ;;  %1723 = vmatprep.subr.mxu0 %v1927_v0 }
 0xa0f   :  { %1724 = vmatpush3.msra.mxu0 %v1340_v55 }
 0xa10   :  { %1725 = vmatprep.subr.mxu0 %v1927_v0 }
 0xa11   :  { %1726 = vmatpush3.msra.mxu0 %v1339_v56 }
 0xa12   :  { %1727 = vmatprep.subr.mxu0 %v1927_v0 }
 0xa13   :  { %1728 = vmatpush3.msra.mxu0 %v1338_v57 }
 0xa14   :  { %1729 = vmatprep.subr.mxu0 %v1927_v0 }
 0xa15   :  { %1730 = vmatpush3.msra.mxu0 %v1337_v58 }
 0xa5f   :  { %v1302_v22 = vpop.f32.mrf.mxu0 }
 0xa60   :  { %v1306_v23 = vadd.f32 %v1302_v22, %v2047_v53 }
 0xa61   :  { %v1712_v24 = vpop.f32.mrf.mxu0 }
 0xa62   :  { %1312 = vrot.lane.b32.xlu1 %v1306_v23, %s1929_s2  ;;  %v1307_v19 = vmul.f32 0.5, %v1306_v23 }
 0xa64   :  { %1778 = vtanh.f32 %v1307_v19 }
 0xa71   :  { %v1779_v27 = vpop.eup %1778 }
 0xa72   :  { %v1309_v28 = vmul.f32 0.5, %v1779_v27 }
 0xa74   :  { %v1310_v29 = vadd.f32 0.5, %v1309_v28 }
 0xa76   :  { %v1322_v42 = vsub.f32 1.0, %v1310_v29 }
 0xa78   :  { %v1323_v44 = vmul.f32 %v1322_v42, %v2152_v20 }
 0xa80   :  { %v1109_v25 = vpop.permute.xlu1 %1108 }
 0xa81   :  { %1111 = vst.msk [vmem:[#allocation2] sm:$0xf] %vm445_vm8, %v1109_v25 }
 0xa88   :  { %v1112_v26 = vld [vmem:[#allocation2] sm:$0xf] }
 0xa89   :  { %1700 = vmatmul.mubr.msk.f32.vlgmr.msra.gmra.mxu1 %vm457_vm9, %v1112_v26 }
 0xad4   :  { %v1313_v30 = vpop.permute.xlu1 %1312 }
 0xad5   :  { %v1315_v31 = vmul.f32 %v1313_v30, %v1310_v29 }
 0xad7   :  { %1317 = vrot.lane.b32.xlu1 %v1315_v31, %s1930_s4 }
 0xb49   :  { %v1318_v32 = vpop.permute.xlu1 %1317  ;;  %v1195_v53 = vpop.f32.mrf.mxu1 }
 0xb4a   :  { %v1320_v33 = vadd.f32 %v1318_v32, %v1306_v23  ;;  %1204 = vrot.lane.b32.xlu0 %v1195_v53, %s1929_s2  ;;  %v1199_v36 = vmul.f32 0.5, %v1195_v53 }
 0xb4b   :  { %v1701_v34 = vpop.f32.mrf.mxu1 }
 0xb4c   :  { %1780 = vtanh.f32 %v1320_v33 }
 0xb4d   :  { %1782 = vtanh.f32 %v1199_v36 }
 0xb59   :  { %v1781_v35 = vpop.eup %1780 }
 0xb5a   :  { %1325 = vrot.lane.b32.xlu1 %v1781_v35, %s1929_s2  ;;  %v1783_v37 = vpop.eup %1782 }
 0xb5b   :  { %v1201_v38 = vmul.f32 0.5, %v1783_v37 }
 0xb5d   :  { %v1202_v39 = vadd.f32 0.5, %v1201_v38 }
 0xb5f   :  { %v1214_v59 = vsub.f32 1.0, %v1202_v39 }
 0xb61   :  { %v1215_v61 = vmul.f32 %v1214_v59, %v2170_v18 }
 0xbbc   :  { %v1205_v40 = vpop.permute.xlu0 %1204 }
 0xbbd   :  { %v1207_v41 = vmul.f32 %v1205_v40, %v1202_v39 }
 0xbbf   :  { %1209 = vrot.lane.b32.xlu0 %v1207_v41, %s1930_s4 }
 0xbcc   :  { %v1326_v43 = vpop.permute.xlu1 %1325 }
 0xbcd   :  { %v1328_v45 = vmul.f32 %v1326_v43, %v1310_v29 }
 0xbcf   :  { %v1329_v46 = vadd.f32 %v1328_v45, %v1323_v44 }
 0xbd1   :  { %1330 = vst.msk [vmem:[#allocation2] sm:$0xf] %vm440_vm7, %v1329_v46 }
 0xc31   :  { %v1210_v47 = vpop.permute.xlu0 %1209 }
 0xc32   :  { %v1212_v48 = vadd.f32 %v1210_v47, %v1195_v53 }
 0xc34   :  { %1784 = vtanh.f32 %v1212_v48 }
 0xc41   :  { %v1785_v54 = vpop.eup %1784 }
 0xc42   :  { %1217 = vrot.lane.b32.xlu0 %v1785_v54, %s1929_s2 }
 0xcb4   :  { %v1218_v60 = vpop.permute.xlu0 %1217 }
 0xcb5   :  { %v1220_v62 = vmul.f32 %v1218_v60, %v1202_v39 }
 0xcb7   :  { %v1221_v63 = vadd.f32 %v1220_v62, %v1215_v61 }
 0xcb9   :  { %1331 = vrot.lane.b32.xlu0 %v1221_v63, %s1930_s4 }
 0xd2b   :  { %v1332_v1 = vpop.permute.xlu0 %1331 }
 0xd2c   :  { %1334 = vst.msk [vmem:[#allocation2] sm:$0xf] %vm445_vm8, %v1332_v1 }
 0xd33   :  { %v1335_v2 = vld [vmem:[#allocation2] sm:$0xf] }
 0xd34   :  { %1732 = vmatmul.mubr.msk.f32.vlgmr.msra.gmra.mxu0 %vm457_vm9, %v1335_v2 }
 0xdf4   :  { %v1418_v3 = vpop.f32.mrf.mxu0 }
 0xdf5   :  { %1427 = vrot.lane.b32.xlu1 %v1418_v3, %s1929_s2  ;;  %v1422_v20 = vmul.f32 0.5, %v1418_v3 }
 0xdf6   :  { %v1733_v4 = vpop.f32.mrf.mxu0 }
 0xdf7   :  { %1786 = vtanh.f32 %v1422_v20 }
 0xe04   :  { %v1787_v0 = vpop.eup %1786 }
 0xe05   :  { %v1424_v5 = vmul.f32 0.5, %v1787_v0 }
 0xe07   :  { %v1425_v6 = vadd.f32 0.5, %v1424_v5 }
 0xe09   :  { %v1437_v13 = vsub.f32 1.0, %v1425_v6 }
 0xe0b   :  { %v1438_v15 = vmul.f32 %v1437_v13, %v1221_v63 }
 0xe67   :  { %v1428_v7 = vpop.permute.xlu1 %1427 }
 0xe68   :  { %v1430_v8 = vmul.f32 %v1428_v7, %v1425_v6 }
 0xe6a   :  { %1432 = vrot.lane.b32.xlu0 %v1430_v8, %s1930_s4 }
 0xe6e   :  { %1000 = vrot.lane.b32.xlu0 %v2170_v18, %s1929_s2 }
 0xedc   :  { %v1433_v9 = vpop.permute.xlu0 %1432 }
 0xedd   :  { %v1435_v10 = vadd.f32 %v1433_v9, %v1418_v3 }
 0xedf   :  { %1788 = vtanh.f32 %v1435_v10 }
 0xee0   :  { %v1001_v11 = vpop.permute.xlu0 %1000 }
 0xee1   :  { %1004 = vst.msk [vmem:[#allocation12] sm:$0xf] %vm1003_vm10, %v1001_v11 }
 0xeec   :  { %v1789_v12 = vpop.eup %1788 }
 0xeed   :  { %1440 = vrot.lane.b32.xlu1 %v1789_v12, %s1929_s2 }
 0xef1   :  { %1223 = vrot.lane.b32.xlu1 %v1221_v63, %s1932_s19 }
 0xf5f   :  { %v1441_v14 = vpop.permute.xlu1 %1440 }
 0xf60   :  { %v1443_v16 = vmul.f32 %v1441_v14, %v1425_v6 }
 0xf62   :  { %v1444_v17 = vadd.f32 %v1443_v16, %v1438_v15 }
 0xf63   :  { %v1224_v18 = vpop.permute.xlu1 %1223 }
 0xf64   :  { %1445 = vst.msk [vmem:[#allocation12 + $0x4] sm:$0xf] %vm440_vm7, %v1444_v17 }
 0xf65   :  { %1227 = vst.msk [vmem:[#allocation12] sm:$0xf] %vm1226_vm11, %v1224_v18 }
 0xf66   :  { %1901 = shalt.err (!%p1898_p1)
}
 0xf67   :  { %1455 = dma.vmem_to_hbm [thread:$0]  %s1453_s21, 128, %s2213_s5, [#allocation5]  }
 0xf68   :  { %1916 = dma.done.wait [#allocation5], 128  }
 0xf69   :  { %1917 = vsyncadd [#allocation5], 4294967168 }
 0xf6a   :  { %1459 = vsyncpa [#allocation4], 1 }
 0xf6b   :  { %1460 = vsyncpa [#allocation7], 1 }
 0xf6c   :  { %1461 = vsyncpa [#allocation10], 1 }
 0xf6d   :  { %1462 = vsyncpa [#allocation5], 1 }

</bundles_post_ra>
